<compile_context>
chip_gen: v6e
topology: v6e:2x2x1
jax: 0.10.0
libtpu: 0.0.40
codegen_flags: <defaults>
</compile_context>

<pallas_src>
import math

import jax
import jax.numpy as jnp
from jax.experimental import pallas as pl
from jax.experimental.pallas import tpu as pltpu

# ---------------- model config ----------------------------------------------
B = 2          # batch
T = 8          # target (decoder) sequence length
S = 8          # source (encoder) sequence length
C = 32         # decoder_embed_dim
H = 4          # decoder_attention_heads
D = C // H     # head dim
FFN = 64       # decoder_ffn_embed_dim
NEG = -1e30    # -inf stand-in for additive masks (kept in f32)
EPS = 1e-5     # LayerNorm eps (PyTorch default)

BT = B * T
BS = B * S
assert BT == BS  # shared (H*BT, KV) score scratch width for both attention blocks

# ---------------- packed activation slab (f32, C lanes) ----------------------
ROW_X = 0                       # (BT, C)   decoder input, batch folded into rows
ROW_ENC = ROW_X + BT            # (BS, C)   encoder output
ROW_SELF_MASK = ROW_ENC + BS    # (H*BT, BT) causal+block-diag mask, replicated per head
ROW_ENC_MASK = ROW_SELF_MASK + H * BT   # (H*BT, BS) padding+block-diag mask, per head
ACT_ROWS = ROW_ENC_MASK + H * BT        # = 160

# ---------------- packed parameter slab (f32, 128 lanes) ---------------------
ROW_SA_QKV = 0      # (C, 3C)  self-attn W_in^T   (q columns pre-scaled by D**-0.5)
ROW_SA_OUT = 32     # (C,  C)  self-attn W_out^T
ROW_EA_Q = 64       # (C,  C)  enc-attn  W_q^T    (pre-scaled)
ROW_EA_KV = 96      # (C, 2C)  enc-attn  W_kv^T
ROW_EA_OUT = 128    # (C,  C)  enc-attn  W_out^T
ROW_FC1 = 160       # (C, FFN)
ROW_FC2 = 192       # (FFN, C)
ROW_SA_B = 256      # biases / LayerNorm params, one per row
ROW_SA_OB = 257
ROW_EA_QB = 258
ROW_EA_KVB = 259
ROW_EA_OB = 260
ROW_F1B = 261
ROW_F2B = 262
ROW_LN_G = (263, 265, 267)
ROW_LN_B = (264, 266, 268)
PAR_ROWS = 272


# ---------------------------- kernel -----------------------------------------
def decoder_layer_kernel(act_ref, par_ref, out_ref, s_ref):
    act = act_ref[...]                        # (ACT_ROWS, C)   f32
    par = par_ref[...]                        # (PAR_ROWS, 128) f32

    x = act[ROW_X:ROW_X + BT, :]                              # (BT, C)
    enc = act[ROW_ENC:ROW_ENC + BS, :]                        # (BS, C)
    self_mask = act[ROW_SELF_MASK:ROW_SELF_MASK + H * BT, 0:BT]   # (H*BT, BT)
    enc_mask = act[ROW_ENC_MASK:ROW_ENC_MASK + H * BT, 0:BS]      # (H*BT, BS)

    def w(row, rows, cols):                   # weight block, bf16 MXU operand
        return par[row:row + rows, 0:cols].astype(jnp.bfloat16)

    def vrow(row, cols):                      # bias / LN row, f32
        return par[row:row + 1, 0:cols]

    def mm(a_f32, w_bf16):                    # bf16 MXU operands, f32 accumulation
        return jnp.dot(a_f32.astype(jnp.bfloat16), w_bf16,
                       preferred_element_type=jnp.float32)

    def layer_norm(v, i):
        g = vrow(ROW_LN_G[i], C)
        b = vrow(ROW_LN_B[i], C)
        mu = jnp.mean(v, axis=-1, keepdims=True)
        cen = v - mu
        var = jnp.mean(cen * cen, axis=-1, keepdims=True)
        return cen * jax.lax.rsqrt(var + EPS) * g + b

    def mha(q_bf, k_bf, v_bf, mask_rep, ow_row, ob_row, need_weights):
        """Multi-head attention with head-batched softmax and per-head output
        projection accumulation (no lane-axis concatenate)."""
        # 1) per-head NT score dots into the row-stacked scratch (aligned rows)
        for h in range(H):
            lo = h * D
            s_ref[h * BT:(h + 1) * BT, :] = jax.lax.dot_general(
                q_bf[:, lo:lo + D], k_bf[:, lo:lo + D],
                (((1,), (1,)), ((), ())),
                preferred_element_type=jnp.float32)           # (BT, KV)
        # 2) ONE softmax for all heads (mask replicated per head on the host)
        s_all = s_ref[...] + mask_rep                          # (H*BT, KV)
        s_all = s_all - jnp.max(s_all, axis=-1, keepdims=True)
        e = jnp.exp(s_all)
        p_all = e * pl.reciprocal(jnp.sum(e, axis=-1, keepdims=True), approx=True)
        # 3) per-head p@v and output-projection accumulation
        acc = None
        prob_sum = None
        for h in range(H):
            lo = h * D
            p_h = p_all[h * BT:(h + 1) * BT, :]                # (BT, KV) free row slice
            pv = jnp.dot(p_h.astype(jnp.bfloat16), v_bf[:, lo:lo + D],
                         preferred_element_type=jnp.float32)   # (BT, D)
            contrib = jnp.dot(pv.astype(jnp.bfloat16), w(ow_row + lo, D, C),
                              preferred_element_type=jnp.float32)  # (BT, C)
            acc = contrib if acc is None else acc + contrib
            if need_weights:
                prob_sum = p_h if prob_sum is None else prob_sum + p_h
        out = acc + vrow(ob_row, C)
        avg = None if prob_sum is None else prob_sum * (1.0 / H)
        return out, avg

    # ---- self-attention block (post-norm), fused QKV projection --------------
    qkv = mm(x, w(ROW_SA_QKV, C, 3 * C)) + vrow(ROW_SA_B, 3 * C)   # (BT, 3C)
    h_sa, _ = mha(qkv[:, 0:C].astype(jnp.bfloat16),          # q (pre-scaled weights)
                  qkv[:, C:2 * C].astype(jnp.bfloat16),      # k
                  qkv[:, 2 * C:3 * C].astype(jnp.bfloat16),  # v
                  self_mask, ROW_SA_OUT, ROW_SA_OB, need_weights=False)
    x1 = layer_norm(x + h_sa, 0)

    # ---- encoder-attention block (static_kv) ---------------------------------
    q = mm(x1, w(ROW_EA_Q, C, C)) + vrow(ROW_EA_QB, C)             # (BT, C)
    kv = mm(enc, w(ROW_EA_KV, C, 2 * C)) + vrow(ROW_EA_KVB, 2 * C)  # (BS, 2C)
    h_ea, attn_avg = mha(q.astype(jnp.bfloat16),
                         kv[:, 0:C].astype(jnp.bfloat16),
                         kv[:, C:2 * C].astype(jnp.bfloat16),
                         enc_mask, ROW_EA_OUT, ROW_EA_OB, need_weights=True)
    x2 = layer_norm(x1 + h_ea, 1)

    # ---- feed-forward block ----------------------------------------------------
    hid = jnp.maximum(mm(x2, w(ROW_FC1, C, FFN)) + vrow(ROW_F1B, FFN), 0.0)
    ff = mm(hid, w(ROW_FC2, FFN, C)) + vrow(ROW_F2B, C)
    x3 = layer_norm(x2 + ff, 2)

    # ---- single packed output: lanes [0,C) = y, lanes [C,C+BS) = attn --------
    out_ref[...] = jnp.concatenate([x3, attn_avg], axis=-1).astype(out_ref.dtype)


# ---------------------------- host-side packing --------------------------------
def pack_params(params):
    """Pack all weights (pre-transposed, q pre-scaled) and vector params into one
    f32 (PAR_ROWS, 128) slab."""
    scale = D ** -0.5
    par = jnp.zeros((PAR_ROWS, 128), jnp.float32)

    def put(slab, row, arr):
        r, c = arr.shape
        return slab.at[row:row + r, 0:c].set(arr.astype(jnp.float32))

    def put_vec(slab, row, vec):
        v = vec.reshape(-1).astype(jnp.float32)
        return slab.at[row, 0:v.shape[0]].set(v)

    sa_wT = params["sa_in_w"].T                                   # (C, 3C)
    sa_wT = jnp.concatenate([sa_wT[:, 0:C] * scale, sa_wT[:, C:]], axis=1)
    par = put(par, ROW_SA_QKV, sa_wT)
    par = put(par, ROW_SA_OUT, params["sa_out_w"].T)

    ea_wT = params["ea_in_w"].T                                   # (C, 3C)
    par = put(par, ROW_EA_Q, ea_wT[:, 0:C] * scale)
    par = put(par, ROW_EA_KV, ea_wT[:, C:3 * C])
    par = put(par, ROW_EA_OUT, params["ea_out_w"].T)
    par = put(par, ROW_FC1, params["fc1_w"].T)
    par = put(par, ROW_FC2, params["fc2_w"].T)

    sa_b = params["sa_in_b"].reshape(-1)
    par = put_vec(par, ROW_SA_B, jnp.concatenate([sa_b[0:C] * scale, sa_b[C:]]))
    par = put_vec(par, ROW_SA_OB, params["sa_out_b"])
    ea_b = params["ea_in_b"].reshape(-1)
    par = put_vec(par, ROW_EA_QB, ea_b[0:C] * scale)
    par = put_vec(par, ROW_EA_KVB, ea_b[C:3 * C])
    par = put_vec(par, ROW_EA_OB, params["ea_out_b"])
    par = put_vec(par, ROW_F1B, params["fc1_b"])
    par = put_vec(par, ROW_F2B, params["fc2_b"])
    for i in range(3):
        par = put_vec(par, ROW_LN_G[i], params[f"ln{i}_g"])
        par = put_vec(par, ROW_LN_B[i], params[f"ln{i}_b"])
    return par


def build_act_slab(x_tbc, enc_sbc, pad_bs):
    """One packed (ACT_ROWS, C) f32 input slab: x | enc | per-head-replicated
    causal/block-diag mask | per-head-replicated padding/block-diag mask."""
    x_flat = jnp.transpose(x_tbc, (1, 0, 2)).reshape(BT, C).astype(jnp.float32)
    enc_flat = jnp.transpose(enc_sbc, (1, 0, 2)).reshape(BS, C).astype(jnp.float32)

    q_batch = jnp.repeat(jnp.arange(B), T)              # (BT,)
    q_time = jnp.tile(jnp.arange(T), B)                 # (BT,)
    same_b = q_batch[:, None] == q_batch[None, :]
    causal_ok = q_time[None, :] <= q_time[:, None]
    self_mask = jnp.where(same_b & causal_ok, 0.0, NEG).astype(jnp.float32)

    k_batch = jnp.repeat(jnp.arange(B), S)               # (BS,)
    not_pad = pad_bs.reshape(BS) <= 0.5
    enc_ok = (q_batch[:, None] == k_batch[None, :]) & not_pad[None, :]
    enc_mask = jnp.where(enc_ok, 0.0, NEG).astype(jnp.float32)

    act = jnp.zeros((ACT_ROWS, C), jnp.float32)
    act = act.at[ROW_X:ROW_X + BT, :].set(x_flat)
    act = act.at[ROW_ENC:ROW_ENC + BS, :].set(enc_flat)
    act = act.at[ROW_SELF_MASK:ROW_SELF_MASK + H * BT, 0:BT].set(
        jnp.tile(self_mask, (H, 1)))
    act = act.at[ROW_ENC_MASK:ROW_ENC_MASK + H * BT, 0:BS].set(
        jnp.tile(enc_mask, (H, 1)))
    return act


@jax.jit
def transformer_decoder_layer(x_tbc, enc_sbc, pad_bs, par_slab):
    """x_tbc: (T,B,C) f32; enc_sbc: (S,B,C) f32; pad_bs: (B,S) 0/1 (1 == padded).
    Returns (y_tbc, attn_bts) matching fairseq's (x, attn)."""
    act = build_act_slab(x_tbc, enc_sbc, pad_bs.astype(jnp.float32))

    packed = pl.pallas_call(
        decoder_layer_kernel,
        out_shape=jax.ShapeDtypeStruct((BT, C + BS), jnp.float32),
        in_specs=[pl.BlockSpec(memory_space=pltpu.MemorySpace.VMEM),
                  pl.BlockSpec(memory_space=pltpu.MemorySpace.VMEM)],
        out_specs=pl.BlockSpec(memory_space=pltpu.MemorySpace.VMEM),
        scratch_shapes=[pltpu.VMEM((H * BT, BT), jnp.float32)],
    )(act, par_slab)

    y_flat = packed[:, 0:C]
    attn_full = packed[:, C:C + BS]                       # (BT, BS), block-diagonal

    y_tbc = jnp.transpose(y_flat.reshape(B, T, C), (1, 0, 2))
    attn_bts = jnp.stack(
        [attn_full[b * T:(b + 1) * T, b * S:(b + 1) * S] for b in range(B)],
        axis=0)
    return y_tbc, attn_bts


# ---------------------- pure-JAX reference (f32) ------------------------------
def reference_forward(x_tbc, enc_sbc, pad_bs, params):
    def ln(v, g, b):
        mu = jnp.mean(v, -1, keepdims=True)
        var = jnp.mean((v - mu) ** 2, -1, keepdims=True)
        return (v - mu) / jnp.sqrt(var + EPS) * g.reshape(1, -1) + b.reshape(1, -1)

    def mha(q_in, kv_in, w, bias, ow, ob, mask_add):
        bias = bias.reshape(-1)
        q = q_in @ w[0:C].T + bias[0:C]
        k = kv_in @ w[C:2 * C].T + bias[C:2 * C]
        v = kv_in @ w[2 * C:].T + bias[2 * C:]
        q = q * (D ** -0.5)
        outs, probs = [], []
        for h in range(H):
            lo, hi = h * D, (h + 1) * D
            s = q[:, lo:hi] @ k[:, lo:hi].T + mask_add
            p = jax.nn.softmax(s, axis=-1)
            outs.append(p @ v[:, lo:hi])
            probs.append(p)
        out = jnp.concatenate(outs, -1) @ ow.T + ob.reshape(-1)
        return out, sum(probs) / H

    x = jnp.transpose(x_tbc, (1, 0, 2))
    enc = jnp.transpose(enc_sbc, (1, 0, 2))
    causal = jnp.where(jnp.arange(T)[None, :] > jnp.arange(T)[:, None], NEG, 0.0)
    ys, attns = [], []
    for b in range(B):
        pad_add = jnp.where(pad_bs[b] > 0.5, NEG, 0.0)[None, :]
        h, _ = mha(x[b], x[b], params["sa_in_w"], params["sa_in_b"],
                   params["sa_out_w"], params["sa_out_b"], causal)
        x1 = ln(x[b] + h, params["ln0_g"], params["ln0_b"])
        h, aw = mha(x1, enc[b], params["ea_in_w"], params["ea_in_b"],
                    params["ea_out_w"], params["ea_out_b"], pad_add)
        x2 = ln(x1 + h, params["ln1_g"], params["ln1_b"])
        hid = jnp.maximum(x2 @ params["fc1_w"].T + params["fc1_b"].reshape(-1), 0.0)
        ff = hid @ params["fc2_w"].T + params["fc2_b"].reshape(-1)
        x3 = ln(x2 + ff, params["ln2_g"], params["ln2_b"])
        ys.append(x3)
        attns.append(aw)
    return jnp.stack(ys, axis=1), jnp.stack(attns, axis=0)


# ---------------------- deterministic parameter init ---------------------------
def xavier_uniform(key, shape):
    fan_out, fan_in = shape
    limit = math.sqrt(6.0 / (fan_in + fan_out))
    return jax.random.uniform(key, shape, jnp.float32, -limit, limit)


def init_params(key):
    ks = jax.random.split(key, 6)
    p = {}
    p["sa_in_w"] = xavier_uniform(ks[0], (3 * C, C))
    p["sa_in_b"] = jnp.zeros((1, 3 * C), jnp.float32)
    p["sa_out_w"] = xavier_uniform(ks[1], (C, C))
    p["sa_out_b"] = jnp.zeros((1, C), jnp.float32)
    p["ea_in_w"] = xavier_uniform(ks[2], (3 * C, C))
    p["ea_in_b"] = jnp.zeros((1, 3 * C), jnp.float32)
    p["ea_out_w"] = xavier_uniform(ks[3], (C, C))
    p["ea_out_b"] = jnp.zeros((1, C), jnp.float32)
    p["fc1_w"] = xavier_uniform(ks[4], (FFN, C))
    p["fc1_b"] = jnp.zeros((1, FFN), jnp.float32)
    p["fc2_w"] = xavier_uniform(ks[5], (C, FFN))
    p["fc2_b"] = jnp.zeros((1, C), jnp.float32)
    for i in range(3):
        p[f"ln{i}_g"] = jnp.ones((1, C), jnp.float32)
        p[f"ln{i}_b"] = jnp.zeros((1, C), jnp.float32)
    return p


if __name__ == "__main__":
    key = jax.random.PRNGKey(0)
    k_param, k_x, k_enc = jax.random.split(key, 3)

    params = init_params(k_param)
    par_slab = pack_params(params)

    x = jax.random.normal(k_x, (T, B, C), jnp.float32)              # (T, B, C)
    encoder_out = jax.random.normal(k_enc, (S, B, C), jnp.float32)  # (S, B, C)
    # batch 0: no padding; batch 1: last 3 source positions padded
    encoder_padding_mask = jnp.array(
        [[0] * S, [0] * (S - 3) + [1] * 3], dtype=jnp.float32)      # (B, S)

    y, attn = transformer_decoder_layer(x, encoder_out,
                                        encoder_padding_mask, par_slab)
    y = jax.block_until_ready(y)
    attn = jax.block_until_ready(attn)

    assert y.shape == (T, B, C) and attn.shape == (B, T, S)
    assert bool(jnp.all(jnp.isfinite(y))) and bool(jnp.all(jnp.isfinite(attn)))
    # attention rows over source positions must sum to ~1
    # (tolerance covers the ~1e-3 relative error of pl.reciprocal(approx=True))
    assert bool(jnp.allclose(jnp.sum(attn, axis=-1), 1.0, atol=5e-3))

    # compare against a pure-JAX f32 reference (kernel uses bf16 MXU operands and
    # an approximate EUP reciprocal, so tolerances are loose but far below any
    # semantic-bug magnitude)
    y_ref, attn_ref = reference_forward(x, encoder_out,
                                        encoder_padding_mask, params)
    assert bool(jnp.max(jnp.abs(y - y_ref)) < 1.5e-1), \
        float(jnp.max(jnp.abs(y - y_ref)))
    assert bool(jnp.max(jnp.abs(attn - attn_ref)) < 5e-2), \
        float(jnp.max(jnp.abs(attn - attn_ref)))

    print("KERNEL_OK")
</pallas_src>

<mosaic_0001>
module attributes {stable_mosaic.version = 11 : i64} {
  func.func @decoder_layer_kernel(%arg0: memref<160x32xf32, #tpu.memory_space<vmem>>, %arg1: memref<272x128xf32, #tpu.memory_space<vmem>>, %arg2: memref<16x48xf32, #tpu.memory_space<vmem>>, %arg3: memref<64x16xf32, #tpu.memory_space<vmem>>) attributes {dimension_semantics = [], scalar_prefetch = 0 : i64, scratch_operands = 1 : i64, tpu.core_type = #tpu.core_type<tc>} {
    %c0 = arith.constant 0 : index
    %c0_0 = arith.constant 0 : index
    %0 = vector.load %arg0[%c0, %c0_0] : memref<160x32xf32, #tpu.memory_space<vmem>>, vector<160x32xf32>
    %c0_1 = arith.constant 0 : index
    %c0_2 = arith.constant 0 : index
    %1 = vector.load %arg1[%c0_1, %c0_2] : memref<272x128xf32, #tpu.memory_space<vmem>>, vector<272x128xf32>
    %2 = vector.extract_strided_slice %0 {offsets = [0, 0], sizes = [16, 32], strides = [1, 1]} : vector<160x32xf32> to vector<16x32xf32>
    %3 = vector.extract_strided_slice %0 {offsets = [16, 0], sizes = [16, 32], strides = [1, 1]} : vector<160x32xf32> to vector<16x32xf32>
    %4 = vector.extract_strided_slice %0 {offsets = [32, 0], sizes = [64, 16], strides = [1, 1]} : vector<160x32xf32> to vector<64x16xf32>
    %5 = vector.extract_strided_slice %0 {offsets = [96, 0], sizes = [64, 16], strides = [1, 1]} : vector<160x32xf32> to vector<64x16xf32>
    %6 = vector.extract_strided_slice %1 {offsets = [0, 0], sizes = [32, 96], strides = [1, 1]} : vector<272x128xf32> to vector<32x96xf32>
    %7 = arith.truncf %6 : vector<32x96xf32> to vector<32x96xbf16>
    %8 = arith.truncf %2 : vector<16x32xf32> to vector<16x32xbf16>
    %cst = arith.constant dense<0.000000e+00> : vector<16x96xf32>
    %9 = tpu.matmul %8, %7, %cst {dimension_numbers = #tpu.dot_dimension_numbers<[1], [0], [0], [1], [0, 0, 1, 1], [], []>} : vector<16x32xbf16>, vector<32x96xbf16>, vector<16x96xf32> -> vector<16x96xf32>
    %10 = vector.extract_strided_slice %1 {offsets = [256, 0], sizes = [1, 96], strides = [1, 1]} : vector<272x128xf32> to vector<1x96xf32>
    %11 = vector.broadcast %10 : vector<1x96xf32> to vector<16x96xf32>
    %12 = arith.addf %9, %11 : vector<16x96xf32>
    %13 = vector.extract_strided_slice %12 {offsets = [0, 0], sizes = [16, 32], strides = [1, 1]} : vector<16x96xf32> to vector<16x32xf32>
    %14 = arith.truncf %13 : vector<16x32xf32> to vector<16x32xbf16>
    %15 = vector.extract_strided_slice %12 {offsets = [0, 32], sizes = [16, 32], strides = [1, 1]} : vector<16x96xf32> to vector<16x32xf32>
    %16 = arith.truncf %15 : vector<16x32xf32> to vector<16x32xbf16>
    %17 = vector.extract_strided_slice %12 {offsets = [0, 64], sizes = [16, 32], strides = [1, 1]} : vector<16x96xf32> to vector<16x32xf32>
    %18 = arith.truncf %17 : vector<16x32xf32> to vector<16x32xbf16>
    %19 = vector.extract_strided_slice %14 {offsets = [0, 0], sizes = [16, 8], strides = [1, 1]} : vector<16x32xbf16> to vector<16x8xbf16>
    %20 = vector.extract_strided_slice %16 {offsets = [0, 0], sizes = [16, 8], strides = [1, 1]} : vector<16x32xbf16> to vector<16x8xbf16>
    %cst_3 = arith.constant dense<0.000000e+00> : vector<16x16xf32>
    %21 = tpu.matmul %19, %20, %cst_3 {dimension_numbers = #tpu.dot_dimension_numbers<[1], [1], [0], [0], [0, 0, 1, 0], [], []>} : vector<16x8xbf16>, vector<16x8xbf16>, vector<16x16xf32> -> vector<16x16xf32>
    %c0_4 = arith.constant 0 : index
    %c0_5 = arith.constant 0 : index
    %22 = vector.load %arg3[%c0_4, %c0_5] : memref<64x16xf32, #tpu.memory_space<vmem>>, vector<16x16xf32>
    tpu.vector_store %arg3[%c0_4, %c0_5], %21 {strides = array<i32>} : memref<64x16xf32, #tpu.memory_space<vmem>>, vector<16x16xf32>,
    %23 = vector.extract_strided_slice %14 {offsets = [0, 8], sizes = [16, 8], strides = [1, 1]} : vector<16x32xbf16> to vector<16x8xbf16>
    %24 = vector.extract_strided_slice %16 {offsets = [0, 8], sizes = [16, 8], strides = [1, 1]} : vector<16x32xbf16> to vector<16x8xbf16>
    %cst_6 = arith.constant dense<0.000000e+00> : vector<16x16xf32>
    %25 = tpu.matmul %23, %24, %cst_6 {dimension_numbers = #tpu.dot_dimension_numbers<[1], [1], [0], [0], [0, 0, 1, 0], [], []>} : vector<16x8xbf16>, vector<16x8xbf16>, vector<16x16xf32> -> vector<16x16xf32>
    %c16 = arith.constant 16 : index
    %c0_7 = arith.constant 0 : index
    %26 = vector.load %arg3[%c16, %c0_7] : memref<64x16xf32, #tpu.memory_space<vmem>>, vector<16x16xf32>
    tpu.vector_store %arg3[%c16, %c0_7], %25 {strides = array<i32>} : memref<64x16xf32, #tpu.memory_space<vmem>>, vector<16x16xf32>,
    %27 = vector.extract_strided_slice %14 {offsets = [0, 16], sizes = [16, 8], strides = [1, 1]} : vector<16x32xbf16> to vector<16x8xbf16>
    %28 = vector.extract_strided_slice %16 {offsets = [0, 16], sizes = [16, 8], strides = [1, 1]} : vector<16x32xbf16> to vector<16x8xbf16>
    %cst_8 = arith.constant dense<0.000000e+00> : vector<16x16xf32>
    %29 = tpu.matmul %27, %28, %cst_8 {dimension_numbers = #tpu.dot_dimension_numbers<[1], [1], [0], [0], [0, 0, 1, 0], [], []>} : vector<16x8xbf16>, vector<16x8xbf16>, vector<16x16xf32> -> vector<16x16xf32>
    %c32 = arith.constant 32 : index
    %c0_9 = arith.constant 0 : index
    %30 = vector.load %arg3[%c32, %c0_9] : memref<64x16xf32, #tpu.memory_space<vmem>>, vector<16x16xf32>
    tpu.vector_store %arg3[%c32, %c0_9], %29 {strides = array<i32>} : memref<64x16xf32, #tpu.memory_space<vmem>>, vector<16x16xf32>,
    %31 = vector.extract_strided_slice %14 {offsets = [0, 24], sizes = [16, 8], strides = [1, 1]} : vector<16x32xbf16> to vector<16x8xbf16>
    %32 = vector.extract_strided_slice %16 {offsets = [0, 24], sizes = [16, 8], strides = [1, 1]} : vector<16x32xbf16> to vector<16x8xbf16>
    %cst_10 = arith.constant dense<0.000000e+00> : vector<16x16xf32>
    %33 = tpu.matmul %31, %32, %cst_10 {dimension_numbers = #tpu.dot_dimension_numbers<[1], [1], [0], [0], [0, 0, 1, 0], [], []>} : vector<16x8xbf16>, vector<16x8xbf16>, vector<16x16xf32> -> vector<16x16xf32>
    %c48 = arith.constant 48 : index
    %c0_11 = arith.constant 0 : index
    %34 = vector.load %arg3[%c48, %c0_11] : memref<64x16xf32, #tpu.memory_space<vmem>>, vector<16x16xf32>
    tpu.vector_store %arg3[%c48, %c0_11], %33 {strides = array<i32>} : memref<64x16xf32, #tpu.memory_space<vmem>>, vector<16x16xf32>,
    %c0_12 = arith.constant 0 : index
    %c0_13 = arith.constant 0 : index
    %35 = vector.load %arg3[%c0_12, %c0_13] : memref<64x16xf32, #tpu.memory_space<vmem>>, vector<64x16xf32>
    %36 = arith.addf %35, %4 : vector<64x16xf32>
    %cst_14 = arith.constant dense<0xFF800000> : vector<64xf32>
    %37 = vector.multi_reduction <maximumf>, %36, %cst_14 [1] : vector<64x16xf32> to vector<64xf32>
    %38 = vector.shape_cast %37 : vector<64xf32> to vector<64x1xf32>
    %39 = vector.broadcast %38 : vector<64x1xf32> to vector<64x16xf32>
    %40 = arith.subf %36, %39 : vector<64x16xf32>
    %41 = math.exp %40 : vector<64x16xf32>
    %cst_15 = arith.constant dense<0.000000e+00> : vector<64xf32>
    %42 = vector.multi_reduction <add>, %41, %cst_15 [1] : vector<64x16xf32> to vector<64xf32>
    %43 = vector.shape_cast %42 : vector<64xf32> to vector<64x1xf32>
    %44 = tpu.reciprocal %43 {approx = true} : vector<64x1xf32> -> vector<64x1xf32>
    %45 = vector.broadcast %44 : vector<64x1xf32> to vector<64x16xf32>
    %46 = arith.mulf %41, %45 : vector<64x16xf32>
    %47 = vector.extract_strided_slice %46 {offsets = [0, 0], sizes = [16, 16], strides = [1, 1]} : vector<64x16xf32> to vector<16x16xf32>
    %48 = arith.truncf %47 : vector<16x16xf32> to vector<16x16xbf16>
    %49 = vector.extract_strided_slice %18 {offsets = [0, 0], sizes = [16, 8], strides = [1, 1]} : vector<16x32xbf16> to vector<16x8xbf16>
    %cst_16 = arith.constant dense<0.000000e+00> : vector<16x8xf32>
    %50 = tpu.matmul %48, %49, %cst_16 {dimension_numbers = #tpu.dot_dimension_numbers<[1], [0], [0], [1], [0, 0, 1, 1], [], []>} : vector<16x16xbf16>, vector<16x8xbf16>, vector<16x8xf32> -> vector<16x8xf32>
    %51 = arith.truncf %50 : vector<16x8xf32> to vector<16x8xbf16>
    %52 = vector.extract_strided_slice %1 {offsets = [32, 0], sizes = [8, 32], strides = [1, 1]} : vector<272x128xf32> to vector<8x32xf32>
    %53 = arith.truncf %52 : vector<8x32xf32> to vector<8x32xbf16>
    %cst_17 = arith.constant dense<0.000000e+00> : vector<16x32xf32>
    %54 = tpu.matmul %51, %53, %cst_17 {dimension_numbers = #tpu.dot_dimension_numbers<[1], [0], [0], [1], [0, 0, 1, 1], [], []>} : vector<16x8xbf16>, vector<8x32xbf16>, vector<16x32xf32> -> vector<16x32xf32>
    %55 = vector.extract_strided_slice %46 {offsets = [16, 0], sizes = [16, 16], strides = [1, 1]} : vector<64x16xf32> to vector<16x16xf32>
    %56 = arith.truncf %55 : vector<16x16xf32> to vector<16x16xbf16>
    %57 = vector.extract_strided_slice %18 {offsets = [0, 8], sizes = [16, 8], strides = [1, 1]} : vector<16x32xbf16> to vector<16x8xbf16>
    %cst_18 = arith.constant dense<0.000000e+00> : vector<16x8xf32>
    %58 = tpu.matmul %56, %57, %cst_18 {dimension_numbers = #tpu.dot_dimension_numbers<[1], [0], [0], [1], [0, 0, 1, 1], [], []>} : vector<16x16xbf16>, vector<16x8xbf16>, vector<16x8xf32> -> vector<16x8xf32>
    %59 = arith.truncf %58 : vector<16x8xf32> to vector<16x8xbf16>
    %60 = vector.extract_strided_slice %1 {offsets = [40, 0], sizes = [8, 32], strides = [1, 1]} : vector<272x128xf32> to vector<8x32xf32>
    %61 = arith.truncf %60 : vector<8x32xf32> to vector<8x32xbf16>
    %cst_19 = arith.constant dense<0.000000e+00> : vector<16x32xf32>
    %62 = tpu.matmul %59, %61, %cst_19 {dimension_numbers = #tpu.dot_dimension_numbers<[1], [0], [0], [1], [0, 0, 1, 1], [], []>} : vector<16x8xbf16>, vector<8x32xbf16>, vector<16x32xf32> -> vector<16x32xf32>
    %63 = arith.addf %54, %62 : vector<16x32xf32>
    %64 = vector.extract_strided_slice %46 {offsets = [32, 0], sizes = [16, 16], strides = [1, 1]} : vector<64x16xf32> to vector<16x16xf32>
    %65 = arith.truncf %64 : vector<16x16xf32> to vector<16x16xbf16>
    %66 = vector.extract_strided_slice %18 {offsets = [0, 16], sizes = [16, 8], strides = [1, 1]} : vector<16x32xbf16> to vector<16x8xbf16>
    %cst_20 = arith.constant dense<0.000000e+00> : vector<16x8xf32>
    %67 = tpu.matmul %65, %66, %cst_20 {dimension_numbers = #tpu.dot_dimension_numbers<[1], [0], [0], [1], [0, 0, 1, 1], [], []>} : vector<16x16xbf16>, vector<16x8xbf16>, vector<16x8xf32> -> vector<16x8xf32>
    %68 = arith.truncf %67 : vector<16x8xf32> to vector<16x8xbf16>
    %69 = vector.extract_strided_slice %1 {offsets = [48, 0], sizes = [8, 32], strides = [1, 1]} : vector<272x128xf32> to vector<8x32xf32>
    %70 = arith.truncf %69 : vector<8x32xf32> to vector<8x32xbf16>
    %cst_21 = arith.constant dense<0.000000e+00> : vector<16x32xf32>
    %71 = tpu.matmul %68, %70, %cst_21 {dimension_numbers = #tpu.dot_dimension_numbers<[1], [0], [0], [1], [0, 0, 1, 1], [], []>} : vector<16x8xbf16>, vector<8x32xbf16>, vector<16x32xf32> -> vector<16x32xf32>
    %72 = arith.addf %63, %71 : vector<16x32xf32>
    %73 = vector.extract_strided_slice %46 {offsets = [48, 0], sizes = [16, 16], strides = [1, 1]} : vector<64x16xf32> to vector<16x16xf32>
    %74 = arith.truncf %73 : vector<16x16xf32> to vector<16x16xbf16>
    %75 = vector.extract_strided_slice %18 {offsets = [0, 24], sizes = [16, 8], strides = [1, 1]} : vector<16x32xbf16> to vector<16x8xbf16>
    %cst_22 = arith.constant dense<0.000000e+00> : vector<16x8xf32>
    %76 = tpu.matmul %74, %75, %cst_22 {dimension_numbers = #tpu.dot_dimension_numbers<[1], [0], [0], [1], [0, 0, 1, 1], [], []>} : vector<16x16xbf16>, vector<16x8xbf16>, vector<16x8xf32> -> vector<16x8xf32>
    %77 = arith.truncf %76 : vector<16x8xf32> to vector<16x8xbf16>
    %78 = vector.extract_strided_slice %1 {offsets = [56, 0], sizes = [8, 32], strides = [1, 1]} : vector<272x128xf32> to vector<8x32xf32>
    %79 = arith.truncf %78 : vector<8x32xf32> to vector<8x32xbf16>
    %cst_23 = arith.constant dense<0.000000e+00> : vector<16x32xf32>
    %80 = tpu.matmul %77, %79, %cst_23 {dimension_numbers = #tpu.dot_dimension_numbers<[1], [0], [0], [1], [0, 0, 1, 1], [], []>} : vector<16x8xbf16>, vector<8x32xbf16>, vector<16x32xf32> -> vector<16x32xf32>
    %81 = arith.addf %72, %80 : vector<16x32xf32>
    %82 = vector.extract_strided_slice %1 {offsets = [257, 0], sizes = [1, 32], strides = [1, 1]} : vector<272x128xf32> to vector<1x32xf32>
    %83 = vector.broadcast %82 : vector<1x32xf32> to vector<16x32xf32>
    %84 = arith.addf %81, %83 : vector<16x32xf32>
    %85 = arith.addf %2, %84 : vector<16x32xf32>
    %86 = vector.extract_strided_slice %1 {offsets = [263, 0], sizes = [1, 32], strides = [1, 1]} : vector<272x128xf32> to vector<1x32xf32>
    %87 = vector.extract_strided_slice %1 {offsets = [264, 0], sizes = [1, 32], strides = [1, 1]} : vector<272x128xf32> to vector<1x32xf32>
    %cst_24 = arith.constant dense<0.000000e+00> : vector<16xf32>
    %88 = vector.multi_reduction <add>, %85, %cst_24 [1] : vector<16x32xf32> to vector<16xf32>
    %89 = vector.shape_cast %88 : vector<16xf32> to vector<16x1xf32>
    %cst_25 = arith.constant 3.200000e+01 : f32
    %90 = vector.broadcast %cst_25 : f32 to vector<16x1xf32>
    %91 = arith.divf %89, %90 : vector<16x1xf32>
    %92 = vector.broadcast %91 : vector<16x1xf32> to vector<16x32xf32>
    %93 = arith.subf %85, %92 : vector<16x32xf32>
    %94 = arith.mulf %93, %93 : vector<16x32xf32>
    %cst_26 = arith.constant dense<0.000000e+00> : vector<16xf32>
    %95 = vector.multi_reduction <add>, %94, %cst_26 [1] : vector<16x32xf32> to vector<16xf32>
    %96 = vector.shape_cast %95 : vector<16xf32> to vector<16x1xf32>
    %cst_27 = arith.constant 3.200000e+01 : f32
    %97 = vector.broadcast %cst_27 : f32 to vector<16x1xf32>
    %98 = arith.divf %96, %97 : vector<16x1xf32>
    %cst_28 = arith.constant 9.99999974E-6 : f32
    %99 = vector.broadcast %cst_28 : f32 to vector<16x1xf32>
    %100 = arith.addf %98, %99 : vector<16x1xf32>
    %101 = math.rsqrt %100 : vector<16x1xf32>
    %102 = vector.broadcast %101 : vector<16x1xf32> to vector<16x32xf32>
    %103 = arith.mulf %93, %102 : vector<16x32xf32>
    %104 = vector.broadcast %86 : vector<1x32xf32> to vector<16x32xf32>
    %105 = arith.mulf %103, %104 : vector<16x32xf32>
    %106 = vector.broadcast %87 : vector<1x32xf32> to vector<16x32xf32>
    %107 = arith.addf %105, %106 : vector<16x32xf32>
    %108 = vector.extract_strided_slice %1 {offsets = [64, 0], sizes = [32, 32], strides = [1, 1]} : vector<272x128xf32> to vector<32x32xf32>
    %109 = arith.truncf %108 : vector<32x32xf32> to vector<32x32xbf16>
    %110 = arith.truncf %107 : vector<16x32xf32> to vector<16x32xbf16>
    %cst_29 = arith.constant dense<0.000000e+00> : vector<16x32xf32>
    %111 = tpu.matmul %110, %109, %cst_29 {dimension_numbers = #tpu.dot_dimension_numbers<[1], [0], [0], [1], [0, 0, 1, 1], [], []>} : vector<16x32xbf16>, vector<32x32xbf16>, vector<16x32xf32> -> vector<16x32xf32>
    %112 = vector.extract_strided_slice %1 {offsets = [258, 0], sizes = [1, 32], strides = [1, 1]} : vector<272x128xf32> to vector<1x32xf32>
    %113 = vector.broadcast %112 : vector<1x32xf32> to vector<16x32xf32>
    %114 = arith.addf %111, %113 : vector<16x32xf32>
    %115 = vector.extract_strided_slice %1 {offsets = [96, 0], sizes = [32, 64], strides = [1, 1]} : vector<272x128xf32> to vector<32x64xf32>
    %116 = arith.truncf %115 : vector<32x64xf32> to vector<32x64xbf16>
    %117 = arith.truncf %3 : vector<16x32xf32> to vector<16x32xbf16>
    %cst_30 = arith.constant dense<0.000000e+00> : vector<16x64xf32>
    %118 = tpu.matmul %117, %116, %cst_30 {dimension_numbers = #tpu.dot_dimension_numbers<[1], [0], [0], [1], [0, 0, 1, 1], [], []>} : vector<16x32xbf16>, vector<32x64xbf16>, vector<16x64xf32> -> vector<16x64xf32>
    %119 = vector.extract_strided_slice %1 {offsets = [259, 0], sizes = [1, 64], strides = [1, 1]} : vector<272x128xf32> to vector<1x64xf32>
    %120 = vector.broadcast %119 : vector<1x64xf32> to vector<16x64xf32>
    %121 = arith.addf %118, %120 : vector<16x64xf32>
    %122 = arith.truncf %114 : vector<16x32xf32> to vector<16x32xbf16>
    %123 = vector.extract_strided_slice %121 {offsets = [0, 0], sizes = [16, 32], strides = [1, 1]} : vector<16x64xf32> to vector<16x32xf32>
    %124 = arith.truncf %123 : vector<16x32xf32> to vector<16x32xbf16>
    %125 = vector.extract_strided_slice %121 {offsets = [0, 32], sizes = [16, 32], strides = [1, 1]} : vector<16x64xf32> to vector<16x32xf32>
    %126 = arith.truncf %125 : vector<16x32xf32> to vector<16x32xbf16>
    %127 = vector.extract_strided_slice %122 {offsets = [0, 0], sizes = [16, 8], strides = [1, 1]} : vector<16x32xbf16> to vector<16x8xbf16>
    %128 = vector.extract_strided_slice %124 {offsets = [0, 0], sizes = [16, 8], strides = [1, 1]} : vector<16x32xbf16> to vector<16x8xbf16>
    %cst_31 = arith.constant dense<0.000000e+00> : vector<16x16xf32>
    %129 = tpu.matmul %127, %128, %cst_31 {dimension_numbers = #tpu.dot_dimension_numbers<[1], [1], [0], [0], [0, 0, 1, 0], [], []>} : vector<16x8xbf16>, vector<16x8xbf16>, vector<16x16xf32> -> vector<16x16xf32>
    %c0_32 = arith.constant 0 : index
    %c0_33 = arith.constant 0 : index
    %130 = vector.load %arg3[%c0_32, %c0_33] : memref<64x16xf32, #tpu.memory_space<vmem>>, vector<16x16xf32>
    tpu.vector_store %arg3[%c0_32, %c0_33], %129 {strides = array<i32>} : memref<64x16xf32, #tpu.memory_space<vmem>>, vector<16x16xf32>,
    %131 = vector.extract_strided_slice %122 {offsets = [0, 8], sizes = [16, 8], strides = [1, 1]} : vector<16x32xbf16> to vector<16x8xbf16>
    %132 = vector.extract_strided_slice %124 {offsets = [0, 8], sizes = [16, 8], strides = [1, 1]} : vector<16x32xbf16> to vector<16x8xbf16>
    %cst_34 = arith.constant dense<0.000000e+00> : vector<16x16xf32>
    %133 = tpu.matmul %131, %132, %cst_34 {dimension_numbers = #tpu.dot_dimension_numbers<[1], [1], [0], [0], [0, 0, 1, 0], [], []>} : vector<16x8xbf16>, vector<16x8xbf16>, vector<16x16xf32> -> vector<16x16xf32>
    %c16_35 = arith.constant 16 : index
    %c0_36 = arith.constant 0 : index
    %134 = vector.load %arg3[%c16_35, %c0_36] : memref<64x16xf32, #tpu.memory_space<vmem>>, vector<16x16xf32>
    tpu.vector_store %arg3[%c16_35, %c0_36], %133 {strides = array<i32>} : memref<64x16xf32, #tpu.memory_space<vmem>>, vector<16x16xf32>,
    %135 = vector.extract_strided_slice %122 {offsets = [0, 16], sizes = [16, 8], strides = [1, 1]} : vector<16x32xbf16> to vector<16x8xbf16>
    %136 = vector.extract_strided_slice %124 {offsets = [0, 16], sizes = [16, 8], strides = [1, 1]} : vector<16x32xbf16> to vector<16x8xbf16>
    %cst_37 = arith.constant dense<0.000000e+00> : vector<16x16xf32>
    %137 = tpu.matmul %135, %136, %cst_37 {dimension_numbers = #tpu.dot_dimension_numbers<[1], [1], [0], [0], [0, 0, 1, 0], [], []>} : vector<16x8xbf16>, vector<16x8xbf16>, vector<16x16xf32> -> vector<16x16xf32>
    %c32_38 = arith.constant 32 : index
    %c0_39 = arith.constant 0 : index
    %138 = vector.load %arg3[%c32_38, %c0_39] : memref<64x16xf32, #tpu.memory_space<vmem>>, vector<16x16xf32>
    tpu.vector_store %arg3[%c32_38, %c0_39], %137 {strides = array<i32>} : memref<64x16xf32, #tpu.memory_space<vmem>>, vector<16x16xf32>,
    %139 = vector.extract_strided_slice %122 {offsets = [0, 24], sizes = [16, 8], strides = [1, 1]} : vector<16x32xbf16> to vector<16x8xbf16>
    %140 = vector.extract_strided_slice %124 {offsets = [0, 24], sizes = [16, 8], strides = [1, 1]} : vector<16x32xbf16> to vector<16x8xbf16>
    %cst_40 = arith.constant dense<0.000000e+00> : vector<16x16xf32>
    %141 = tpu.matmul %139, %140, %cst_40 {dimension_numbers = #tpu.dot_dimension_numbers<[1], [1], [0], [0], [0, 0, 1, 0], [], []>} : vector<16x8xbf16>, vector<16x8xbf16>, vector<16x16xf32> -> vector<16x16xf32>
    %c48_41 = arith.constant 48 : index
    %c0_42 = arith.constant 0 : index
    %142 = vector.load %arg3[%c48_41, %c0_42] : memref<64x16xf32, #tpu.memory_space<vmem>>, vector<16x16xf32>
    tpu.vector_store %arg3[%c48_41, %c0_42], %141 {strides = array<i32>} : memref<64x16xf32, #tpu.memory_space<vmem>>, vector<16x16xf32>,
    %c0_43 = arith.constant 0 : index
    %c0_44 = arith.constant 0 : index
    %143 = vector.load %arg3[%c0_43, %c0_44] : memref<64x16xf32, #tpu.memory_space<vmem>>, vector<64x16xf32>
    %144 = arith.addf %143, %5 : vector<64x16xf32>
    %cst_45 = arith.constant dense<0xFF800000> : vector<64xf32>
    %145 = vector.multi_reduction <maximumf>, %144, %cst_45 [1] : vector<64x16xf32> to vector<64xf32>
    %146 = vector.shape_cast %145 : vector<64xf32> to vector<64x1xf32>
    %147 = vector.broadcast %146 : vector<64x1xf32> to vector<64x16xf32>
    %148 = arith.subf %144, %147 : vector<64x16xf32>
    %149 = math.exp %148 : vector<64x16xf32>
    %cst_46 = arith.constant dense<0.000000e+00> : vector<64xf32>
    %150 = vector.multi_reduction <add>, %149, %cst_46 [1] : vector<64x16xf32> to vector<64xf32>
    %151 = vector.shape_cast %150 : vector<64xf32> to vector<64x1xf32>
    %152 = tpu.reciprocal %151 {approx = true} : vector<64x1xf32> -> vector<64x1xf32>
    %153 = vector.broadcast %152 : vector<64x1xf32> to vector<64x16xf32>
    %154 = arith.mulf %149, %153 : vector<64x16xf32>
    %155 = vector.extract_strided_slice %154 {offsets = [0, 0], sizes = [16, 16], strides = [1, 1]} : vector<64x16xf32> to vector<16x16xf32>
    %156 = arith.truncf %155 : vector<16x16xf32> to vector<16x16xbf16>
    %157 = vector.extract_strided_slice %126 {offsets = [0, 0], sizes = [16, 8], strides = [1, 1]} : vector<16x32xbf16> to vector<16x8xbf16>
    %cst_47 = arith.constant dense<0.000000e+00> : vector<16x8xf32>
    %158 = tpu.matmul %156, %157, %cst_47 {dimension_numbers = #tpu.dot_dimension_numbers<[1], [0], [0], [1], [0, 0, 1, 1], [], []>} : vector<16x16xbf16>, vector<16x8xbf16>, vector<16x8xf32> -> vector<16x8xf32>
    %159 = arith.truncf %158 : vector<16x8xf32> to vector<16x8xbf16>
    %160 = vector.extract_strided_slice %1 {offsets = [128, 0], sizes = [8, 32], strides = [1, 1]} : vector<272x128xf32> to vector<8x32xf32>
    %161 = arith.truncf %160 : vector<8x32xf32> to vector<8x32xbf16>
    %cst_48 = arith.constant dense<0.000000e+00> : vector<16x32xf32>
    %162 = tpu.matmul %159, %161, %cst_48 {dimension_numbers = #tpu.dot_dimension_numbers<[1], [0], [0], [1], [0, 0, 1, 1], [], []>} : vector<16x8xbf16>, vector<8x32xbf16>, vector<16x32xf32> -> vector<16x32xf32>
    %163 = vector.extract_strided_slice %154 {offsets = [16, 0], sizes = [16, 16], strides = [1, 1]} : vector<64x16xf32> to vector<16x16xf32>
    %164 = arith.truncf %163 : vector<16x16xf32> to vector<16x16xbf16>
    %165 = vector.extract_strided_slice %126 {offsets = [0, 8], sizes = [16, 8], strides = [1, 1]} : vector<16x32xbf16> to vector<16x8xbf16>
    %cst_49 = arith.constant dense<0.000000e+00> : vector<16x8xf32>
    %166 = tpu.matmul %164, %165, %cst_49 {dimension_numbers = #tpu.dot_dimension_numbers<[1], [0], [0], [1], [0, 0, 1, 1], [], []>} : vector<16x16xbf16>, vector<16x8xbf16>, vector<16x8xf32> -> vector<16x8xf32>
    %167 = arith.truncf %166 : vector<16x8xf32> to vector<16x8xbf16>
    %168 = vector.extract_strided_slice %1 {offsets = [136, 0], sizes = [8, 32], strides = [1, 1]} : vector<272x128xf32> to vector<8x32xf32>
    %169 = arith.truncf %168 : vector<8x32xf32> to vector<8x32xbf16>
    %cst_50 = arith.constant dense<0.000000e+00> : vector<16x32xf32>
    %170 = tpu.matmul %167, %169, %cst_50 {dimension_numbers = #tpu.dot_dimension_numbers<[1], [0], [0], [1], [0, 0, 1, 1], [], []>} : vector<16x8xbf16>, vector<8x32xbf16>, vector<16x32xf32> -> vector<16x32xf32>
    %171 = arith.addf %162, %170 : vector<16x32xf32>
    %172 = arith.addf %155, %163 : vector<16x16xf32>
    %173 = vector.extract_strided_slice %154 {offsets = [32, 0], sizes = [16, 16], strides = [1, 1]} : vector<64x16xf32> to vector<16x16xf32>
    %174 = arith.truncf %173 : vector<16x16xf32> to vector<16x16xbf16>
    %175 = vector.extract_strided_slice %126 {offsets = [0, 16], sizes = [16, 8], strides = [1, 1]} : vector<16x32xbf16> to vector<16x8xbf16>
    %cst_51 = arith.constant dense<0.000000e+00> : vector<16x8xf32>
    %176 = tpu.matmul %174, %175, %cst_51 {dimension_numbers = #tpu.dot_dimension_numbers<[1], [0], [0], [1], [0, 0, 1, 1], [], []>} : vector<16x16xbf16>, vector<16x8xbf16>, vector<16x8xf32> -> vector<16x8xf32>
    %177 = arith.truncf %176 : vector<16x8xf32> to vector<16x8xbf16>
    %178 = vector.extract_strided_slice %1 {offsets = [144, 0], sizes = [8, 32], strides = [1, 1]} : vector<272x128xf32> to vector<8x32xf32>
    %179 = arith.truncf %178 : vector<8x32xf32> to vector<8x32xbf16>
    %cst_52 = arith.constant dense<0.000000e+00> : vector<16x32xf32>
    %180 = tpu.matmul %177, %179, %cst_52 {dimension_numbers = #tpu.dot_dimension_numbers<[1], [0], [0], [1], [0, 0, 1, 1], [], []>} : vector<16x8xbf16>, vector<8x32xbf16>, vector<16x32xf32> -> vector<16x32xf32>
    %181 = arith.addf %171, %180 : vector<16x32xf32>
    %182 = arith.addf %172, %173 : vector<16x16xf32>
    %183 = vector.extract_strided_slice %154 {offsets = [48, 0], sizes = [16, 16], strides = [1, 1]} : vector<64x16xf32> to vector<16x16xf32>
    %184 = arith.truncf %183 : vector<16x16xf32> to vector<16x16xbf16>
    %185 = vector.extract_strided_slice %126 {offsets = [0, 24], sizes = [16, 8], strides = [1, 1]} : vector<16x32xbf16> to vector<16x8xbf16>
    %cst_53 = arith.constant dense<0.000000e+00> : vector<16x8xf32>
    %186 = tpu.matmul %184, %185, %cst_53 {dimension_numbers = #tpu.dot_dimension_numbers<[1], [0], [0], [1], [0, 0, 1, 1], [], []>} : vector<16x16xbf16>, vector<16x8xbf16>, vector<16x8xf32> -> vector<16x8xf32>
    %187 = arith.truncf %186 : vector<16x8xf32> to vector<16x8xbf16>
    %188 = vector.extract_strided_slice %1 {offsets = [152, 0], sizes = [8, 32], strides = [1, 1]} : vector<272x128xf32> to vector<8x32xf32>
    %189 = arith.truncf %188 : vector<8x32xf32> to vector<8x32xbf16>
    %cst_54 = arith.constant dense<0.000000e+00> : vector<16x32xf32>
    %190 = tpu.matmul %187, %189, %cst_54 {dimension_numbers = #tpu.dot_dimension_numbers<[1], [0], [0], [1], [0, 0, 1, 1], [], []>} : vector<16x8xbf16>, vector<8x32xbf16>, vector<16x32xf32> -> vector<16x32xf32>
    %191 = arith.addf %181, %190 : vector<16x32xf32>
    %192 = arith.addf %182, %183 : vector<16x16xf32>
    %193 = vector.extract_strided_slice %1 {offsets = [260, 0], sizes = [1, 32], strides = [1, 1]} : vector<272x128xf32> to vector<1x32xf32>
    %194 = vector.broadcast %193 : vector<1x32xf32> to vector<16x32xf32>
    %195 = arith.addf %191, %194 : vector<16x32xf32>
    %cst_55 = arith.constant 2.500000e-01 : f32
    %196 = vector.broadcast %cst_55 : f32 to vector<16x16xf32>
    %197 = arith.mulf %192, %196 : vector<16x16xf32>
    %198 = arith.addf %107, %195 : vector<16x32xf32>
    %199 = vector.extract_strided_slice %1 {offsets = [265, 0], sizes = [1, 32], strides = [1, 1]} : vector<272x128xf32> to vector<1x32xf32>
    %200 = vector.extract_strided_slice %1 {offsets = [266, 0], sizes = [1, 32], strides = [1, 1]} : vector<272x128xf32> to vector<1x32xf32>
    %cst_56 = arith.constant dense<0.000000e+00> : vector<16xf32>
    %201 = vector.multi_reduction <add>, %198, %cst_56 [1] : vector<16x32xf32> to vector<16xf32>
    %202 = vector.shape_cast %201 : vector<16xf32> to vector<16x1xf32>
    %cst_57 = arith.constant 3.200000e+01 : f32
    %203 = vector.broadcast %cst_57 : f32 to vector<16x1xf32>
    %204 = arith.divf %202, %203 : vector<16x1xf32>
    %205 = vector.broadcast %204 : vector<16x1xf32> to vector<16x32xf32>
    %206 = arith.subf %198, %205 : vector<16x32xf32>
    %207 = arith.mulf %206, %206 : vector<16x32xf32>
    %cst_58 = arith.constant dense<0.000000e+00> : vector<16xf32>
    %208 = vector.multi_reduction <add>, %207, %cst_58 [1] : vector<16x32xf32> to vector<16xf32>
    %209 = vector.shape_cast %208 : vector<16xf32> to vector<16x1xf32>
    %cst_59 = arith.constant 3.200000e+01 : f32
    %210 = vector.broadcast %cst_59 : f32 to vector<16x1xf32>
    %211 = arith.divf %209, %210 : vector<16x1xf32>
    %cst_60 = arith.constant 9.99999974E-6 : f32
    %212 = vector.broadcast %cst_60 : f32 to vector<16x1xf32>
    %213 = arith.addf %211, %212 : vector<16x1xf32>
    %214 = math.rsqrt %213 : vector<16x1xf32>
    %215 = vector.broadcast %214 : vector<16x1xf32> to vector<16x32xf32>
    %216 = arith.mulf %206, %215 : vector<16x32xf32>
    %217 = vector.broadcast %199 : vector<1x32xf32> to vector<16x32xf32>
    %218 = arith.mulf %216, %217 : vector<16x32xf32>
    %219 = vector.broadcast %200 : vector<1x32xf32> to vector<16x32xf32>
    %220 = arith.addf %218, %219 : vector<16x32xf32>
    %221 = vector.extract_strided_slice %1 {offsets = [160, 0], sizes = [32, 64], strides = [1, 1]} : vector<272x128xf32> to vector<32x64xf32>
    %222 = arith.truncf %221 : vector<32x64xf32> to vector<32x64xbf16>
    %223 = arith.truncf %220 : vector<16x32xf32> to vector<16x32xbf16>
    %cst_61 = arith.constant dense<0.000000e+00> : vector<16x64xf32>
    %224 = tpu.matmul %223, %222, %cst_61 {dimension_numbers = #tpu.dot_dimension_numbers<[1], [0], [0], [1], [0, 0, 1, 1], [], []>} : vector<16x32xbf16>, vector<32x64xbf16>, vector<16x64xf32> -> vector<16x64xf32>
    %225 = vector.extract_strided_slice %1 {offsets = [261, 0], sizes = [1, 64], strides = [1, 1]} : vector<272x128xf32> to vector<1x64xf32>
    %226 = vector.broadcast %225 : vector<1x64xf32> to vector<16x64xf32>
    %227 = arith.addf %224, %226 : vector<16x64xf32>
    %cst_62 = arith.constant 0.000000e+00 : f32
    %228 = vector.broadcast %cst_62 : f32 to vector<16x64xf32>
    %229 = arith.maximumf %227, %228 : vector<16x64xf32>
    %230 = vector.extract_strided_slice %1 {offsets = [192, 0], sizes = [64, 32], strides = [1, 1]} : vector<272x128xf32> to vector<64x32xf32>
    %231 = arith.truncf %230 : vector<64x32xf32> to vector<64x32xbf16>
    %232 = arith.truncf %229 : vector<16x64xf32> to vector<16x64xbf16>
    %cst_63 = arith.constant dense<0.000000e+00> : vector<16x32xf32>
    %233 = tpu.matmul %232, %231, %cst_63 {dimension_numbers = #tpu.dot_dimension_numbers<[1], [0], [0], [1], [0, 0, 1, 1], [], []>} : vector<16x64xbf16>, vector<64x32xbf16>, vector<16x32xf32> -> vector<16x32xf32>
    %234 = vector.extract_strided_slice %1 {offsets = [262, 0], sizes = [1, 32], strides = [1, 1]} : vector<272x128xf32> to vector<1x32xf32>
    %235 = vector.broadcast %234 : vector<1x32xf32> to vector<16x32xf32>
    %236 = arith.addf %233, %235 : vector<16x32xf32>
    %237 = arith.addf %220, %236 : vector<16x32xf32>
    %238 = vector.extract_strided_slice %1 {offsets = [267, 0], sizes = [1, 32], strides = [1, 1]} : vector<272x128xf32> to vector<1x32xf32>
    %239 = vector.extract_strided_slice %1 {offsets = [268, 0], sizes = [1, 32], strides = [1, 1]} : vector<272x128xf32> to vector<1x32xf32>
    %cst_64 = arith.constant dense<0.000000e+00> : vector<16xf32>
    %240 = vector.multi_reduction <add>, %237, %cst_64 [1] : vector<16x32xf32> to vector<16xf32>
    %241 = vector.shape_cast %240 : vector<16xf32> to vector<16x1xf32>
    %cst_65 = arith.constant 3.200000e+01 : f32
    %242 = vector.broadcast %cst_65 : f32 to vector<16x1xf32>
    %243 = arith.divf %241, %242 : vector<16x1xf32>
    %244 = vector.broadcast %243 : vector<16x1xf32> to vector<16x32xf32>
    %245 = arith.subf %237, %244 : vector<16x32xf32>
    %246 = arith.mulf %245, %245 : vector<16x32xf32>
    %cst_66 = arith.constant dense<0.000000e+00> : vector<16xf32>
    %247 = vector.multi_reduction <add>, %246, %cst_66 [1] : vector<16x32xf32> to vector<16xf32>
    %248 = vector.shape_cast %247 : vector<16xf32> to vector<16x1xf32>
    %cst_67 = arith.constant 3.200000e+01 : f32
    %249 = vector.broadcast %cst_67 : f32 to vector<16x1xf32>
    %250 = arith.divf %248, %249 : vector<16x1xf32>
    %cst_68 = arith.constant 9.99999974E-6 : f32
    %251 = vector.broadcast %cst_68 : f32 to vector<16x1xf32>
    %252 = arith.addf %250, %251 : vector<16x1xf32>
    %253 = math.rsqrt %252 : vector<16x1xf32>
    %254 = vector.broadcast %253 : vector<16x1xf32> to vector<16x32xf32>
    %255 = arith.mulf %245, %254 : vector<16x32xf32>
    %256 = vector.broadcast %238 : vector<1x32xf32> to vector<16x32xf32>
    %257 = arith.mulf %255, %256 : vector<16x32xf32>
    %258 = vector.broadcast %239 : vector<1x32xf32> to vector<16x32xf32>
    %259 = arith.addf %257, %258 : vector<16x32xf32>
    %260 = tpu.concatenate %259, %197 in 1 : vector<16x32xf32>, vector<16x16xf32> -> vector<16x48xf32>
    %c0_69 = arith.constant 0 : index
    %c0_70 = arith.constant 0 : index
    %261 = vector.load %arg2[%c0_69, %c0_70] : memref<16x48xf32, #tpu.memory_space<vmem>>, vector<16x48xf32>
    tpu.vector_store %arg2[%c0_69, %c0_70], %260 {strides = array<i32>} : memref<16x48xf32, #tpu.memory_space<vmem>>, vector<16x48xf32>,
    return
  }
}

</mosaic_0001>

<bundles_post_ra>
// kernel: transformer_decoder_layer.1
= control target key start
LH: loop header
LB: loop body
LE: loop exit
PB: predicated region body
PF: predicated region fallthrough
CT: control target
= control target key end

     0   :  { %v2277_v0 = vmov 0.0   ;;  %vm2278_vm0 = vmmov 0   ;;  %vm73_vm1 = vcmask 261120   ;;  %v69_v10 = vlaneseq  ;;  %s2279_s23 = smov 96   ;;  %s2280_s24 = smov 88   ;;  %s2797_s1 = inlined_call_operand.vmem [shape: f32[272,128], index: 1, kind: input, shape index: {}]   ;;  %s2798_s0 = inlined_call_operand.vmem [shape: f32[160,32], index: 0, kind: input, shape index: {}]   ;;  %s2799_s2 = inlined_call_operand.vmem [shape: f32[16,48], index: 2, kind: output, shape index: {}]  }
   0x1   :  { %1998 = vmatprep.subr.bf16.mxu1 %v2277_v0  ;;  %v34_v1 = vld [vmem:[%s2797_s1 + $0x10] sm:$0xff]  ;;  %v35_v2 = vld [vmem:[%s2797_s1 + $0x18] sm:$0xff]  ;;  %v32_v3 = vld [vmem:[%s2797_s1] sm:$0xff]  ;;  %2002 = vmatprep.mubr.msk.bf16.mxu1 %vm2278_vm0, %v2277_v0  ;;  %s2281_s25 = smov 80   ;;  %s2282_s26 = smov 120   ;;  %vm122_vm2 = vcmask 64512  }
   0x2   :  { %v67_v4 = vpack.c.bf16 %v35_v2, %v34_v1  ;;  %v33_v5 = vld [vmem:[%s2797_s1 + $0x8] sm:$0xff]  ;;  %2012 = vmatprep.subr.bf16.mxu0 %v2277_v0  ;;  %2014 = vmatprep.mubr.msk.bf16.mxu0 %vm2278_vm0, %v2277_v0  ;;  %v2327_v7 = vld [vmem:[%s2798_s0] sm:$0xff]  ;;  %v2341_v11 = vshrl.u32 %v69_v10, 7  ;;  %s2283_s27 = smov 72   ;;  %s2284_s28 = smov 112   ;;  %vm170_vm3 = vcmask 130048  }
   0x3   :  { %v66_v6 = vpack.c.bf16 %v33_v5, %v32_v3  ;;  %v2332_v8 = vld [vmem:[%s2798_s0 + $0x8] sm:$0xff]  ;;  %v2347_v13 = vld [vmem:[%s2797_s1 + $0x100] sm:$0xff]  ;;  %s2285_s29 = smov 104   ;;  %v18_v41 = vld [vmem:[%s2798_s0 + $0x30] sm:$0xff]  ;;  %s2286_s18 = smov 56   ;;  %vm539_vm4 = vcmask 1043456  }
   0x4   :  { %1999 = vmatpush3.bf16.msra.mxu1 %v67_v4  ;;  %v68_v9 = vpack.c.bf16 %v2332_v8, %v2327_v7  ;;  %v71_v12 = vsub.s32 0, %v2341_v11  ;;  %v19_v48 = vld [vmem:[%s2798_s0 + $0x38] sm:$0xff]  ;;  %v16_v2 = vld [vmem:[%s2798_s0 + $0x20] sm:$0xff]  ;;  %s2287_s19 = smov 64   ;;  %s2288_s20 = smov 48   ;;  %vm1802_vm5 = vcmask 523264  }
   0x5   :  { %2000 = vmatprep.subr.bf16.mxu1 %v2277_v0  ;;  %s2289_s21 = smov 40   ;;  %vm1897_vm6 = vcmask 392192  }
   0x6   :  { %v72_v15 = vrot.slane %v2347_v13, %v71_v12 }
   0x8   :  { %2001 = vmatpush3.bf16.msra.mxu1 %v66_v6 }
   0x9   :  { %2006 = vmatprep.subr.bf16.mxu1 %v2277_v0 }
   0xb   :  { %2003 = vmatmul.mubr.msk.bf16.vlgmr.msra.gmra.mxu1 %vm73_vm1, %v68_v9  ;;  %v17_v9 = vld [vmem:[%s2798_s0 + $0x28] sm:$0xff] }
   0xc   :  { %2008 = vmatprep.mubr.msk.bf16.mxu1 %vm2278_vm0, %v2277_v0 }
  0xcb   :  { %v111_v14 = vpop.f32.mrf.mxu1 }
  0xcc   :  { %v112_v18 = vadd.f32 %v111_v14, %v72_v15 }
  0xcd   :  { %v2004_v16 = vpop.f32.mrf.mxu1 }
  0xce   :  { %v20_v16 = vld [vmem:[%s2798_s0 + $0x40] sm:$0xff] }
  0xcf   :  { %v114_v17 = vpop.f32.mrf.mxu1 }
  0xd0   :  { %v115_v19 = vadd.f32 %v114_v17, %v72_v15 }
  0xd1   :  { %v2005_v20 = vpop.f32.mrf.mxu1 }
  0xd2   :  { %v2352_v21 = vpack.c.bf16 %v115_v19, %v112_v18  ;;  %v21_v20 = vld [vmem:[%s2798_s0 + $0x48] sm:$0xff] }
  0xd4   :  { %120 = vrot.lane.b32.xlu1 %v2352_v21, %s2279_s23  ;;  %175 = vrot.lane.b32.xlu0 %v2352_v21, %s2280_s24 }
  0xd8   :  { %228 = vrot.lane.b32.xlu1 %v2352_v21, %s2281_s25  ;;  %173 = vrot.lane.b32.xlu0 %v2352_v21, %s2282_s26 }
  0xdc   :  { %281 = vrot.lane.b32.xlu1 %v2352_v21, %s2283_s27  ;;  %226 = vrot.lane.b32.xlu0 %v2352_v21, %s2284_s28 }
  0xe0   :  { %279 = vrot.lane.b32.xlu0 %v2352_v21, %s2285_s29 }
 0x146   :  { %v121_v22 = vpop.permute.xlu1 %120  ;;  %v176_v23 = vpop.permute.xlu0 %175 }
 0x147   :  { %v127_v24 = vsel %vm122_vm2, %v121_v22, 0  ;;  %v181_v25 = vsel %vm122_vm2, %v176_v23, 0 }
 0x148   :  { %2007 = vmatpush3.bf16.xpose.msra.mxu1 %v127_v24  ;;  %2013 = vmatpush3.bf16.xpose.msra.mxu0 %v181_v25  ;;  %v22_v25 = vld [vmem:[%s2798_s0 + $0x50] sm:$0xff] }
 0x149   :  { %2018 = vmatprep.subr.bf16.mxu1 %v2277_v0  ;;  %2024 = vmatprep.subr.bf16.mxu0 %v2277_v0 }
 0x14a   :  { %v229_v26 = vpop.permute.xlu1 %228  ;;  %v174_v27 = vpop.permute.xlu0 %173 }
 0x14b   :  { %v234_v29 = vsel %vm122_vm2, %v229_v26, 0 }
 0x14e   :  { %v282_v28 = vpop.permute.xlu1 %281  ;;  %v227_v31 = vpop.permute.xlu0 %226 }
 0x14f   :  { %v287_v30 = vsel %vm122_vm2, %v282_v28, 0  ;;  %2009 = vmatmul.mubr.msk.bf16.vlgmr.msra.gmra.mxu1 %vm122_vm2, %v2352_v21  ;;  %2015 = vmatmul.mubr.msk.bf16.vlgmr.msra.gmra.mxu0 %vm122_vm2, %v174_v27 }
 0x150   :  { %2019 = vmatpush3.bf16.xpose.msra.mxu1 %v234_v29  ;;  %2025 = vmatpush3.bf16.xpose.msra.mxu0 %v287_v30  ;;  %v23_v29 = vld [vmem:[%s2798_s0 + $0x58] sm:$0xff] }
 0x151   :  { %2020 = vmatprep.mubr.msk.bf16.mxu1 %vm2278_vm0, %v2277_v0  ;;  %2026 = vmatprep.mubr.msk.bf16.mxu0 %vm2278_vm0, %v2277_v0 }
 0x152   :  { %2036 = vmatprep.subr.bf16.mxu0 %v2277_v0  ;;  %2030 = vmatprep.subr.bf16.mxu1 %v2277_v0  ;;  %v280_v32 = vpop.permute.xlu0 %279 }
 0x157   :  { %2021 = vmatmul.mubr.msk.bf16.vlgmr.msra.gmra.mxu1 %vm122_vm2, %v227_v31  ;;  %2027 = vmatmul.mubr.msk.bf16.vlgmr.msra.gmra.mxu0 %vm122_vm2, %v280_v32 }
 0x158   :  { %2038 = vmatprep.mubr.msk.bf16.mxu0 %vm2278_vm0, %v2277_v0  ;;  %2032 = vmatprep.mubr.msk.bf16.mxu1 %vm2278_vm0, %v2277_v0 }
 0x20f   :  { %v163_v33 = vpop.f32.mrf.mxu1  ;;  %v217_v34 = vpop.f32.mrf.mxu0 }
 0x210   :  { %171 = vst.msk [vmem:[#allocation2] sm:$0xff] %vm170_vm3, %v163_v33  ;;  %224 = vst.msk [vmem:[#allocation2 + $0x10] sm:$0xff] %vm170_vm3, %v217_v34 }
 0x211   :  { %v2010_v35 = vpop.f32.mrf.mxu1  ;;  %v2016_v36 = vpop.f32.mrf.mxu0 }
 0x213   :  { %v166_v37 = vpop.f32.mrf.mxu1  ;;  %v220_v38 = vpop.f32.mrf.mxu0 }
 0x214   :  { %172 = vst.msk [vmem:[#allocation2 + $0x8] sm:$0xff] %vm170_vm3, %v166_v37  ;;  %225 = vst.msk [vmem:[#allocation2 + $0x18] sm:$0xff] %vm170_vm3, %v220_v38 }
 0x215   :  { %v2011_v39 = vpop.f32.mrf.mxu1  ;;  %v2017_v40 = vpop.f32.mrf.mxu0 }
 0x217   :  { %v270_v42 = vpop.f32.mrf.mxu1  ;;  %v323_v43 = vpop.f32.mrf.mxu0  ;;  %v334_v44 = vld [vmem:[#allocation2 + $0x10] sm:$0xff]  ;;  %v332_v3 = vld [vmem:[#allocation2] sm:$0xff] }
 0x218   :  { %277 = vst.msk [vmem:[#allocation2 + $0x20] sm:$0xff] %vm170_vm3, %v270_v42  ;;  %330 = vst.msk [vmem:[#allocation2 + $0x30] sm:$0xff] %vm170_vm3, %v323_v43  ;;  %v342_v45 = vadd.f32 %v334_v44, %v18_v41  ;;  %v340_v6 = vadd.f32 %v332_v3, %v16_v2 }
 0x219   :  { %v2022_v46 = vpop.f32.mrf.mxu1  ;;  %v2028_v47 = vpop.f32.mrf.mxu0 }
 0x21a   :  { %v354_v49 = vsel %vm170_vm3, %v342_v45, -inf  ;;  %v348_v14 = vsel %vm170_vm3, %v340_v6, -inf }
 0x21b   :  { %355 = vmax.xlane.f32.xlu1 %v354_v49  ;;  %v273_v50 = vpop.f32.mrf.mxu1  ;;  %v326_v51 = vpop.f32.mrf.mxu0  ;;  %v335_v52 = vld [vmem:[#allocation2 + $0x18] sm:$0xff]  ;;  %v333_v10 = vld [vmem:[#allocation2 + $0x8] sm:$0xff] }
 0x21c   :  { %278 = vst.msk [vmem:[#allocation2 + $0x28] sm:$0xff] %vm170_vm3, %v273_v50  ;;  %331 = vst.msk [vmem:[#allocation2 + $0x38] sm:$0xff] %vm170_vm3, %v326_v51  ;;  %v343_v53 = vadd.f32 %v335_v52, %v19_v48  ;;  %v341_v15 = vadd.f32 %v333_v10, %v17_v9 }
 0x21d   :  { %v2023_v54 = vpop.f32.mrf.mxu1  ;;  %v2029_v55 = vpop.f32.mrf.mxu0 }
 0x21e   :  { %v357_v56 = vsel %vm170_vm3, %v343_v53, -inf  ;;  %v351_v18 = vsel %vm170_vm3, %v341_v15, -inf }
 0x21f   :  { %358 = vmax.xlane.f32.xlu0 %v357_v56  ;;  %v336_v17 = vld [vmem:[#allocation2 + $0x20] sm:$0xff]  ;;  %v338_v26 = vld [vmem:[#allocation2 + $0x30] sm:$0xff] }
 0x220   :  { %v344_v19 = vadd.f32 %v336_v17, %v20_v16  ;;  %v346_v28 = vadd.f32 %v338_v26, %v22_v25  ;;  %v37_v17 = vld [vmem:[%s2797_s1 + $0x28] sm:$0xff] }
 0x222   :  { %v360_v23 = vsel %vm170_vm3, %v344_v19, -inf  ;;  %v366_v31 = vsel %vm170_vm3, %v346_v28, -inf }
 0x223   :  { %v337_v22 = vld [vmem:[#allocation2 + $0x28] sm:$0xff]  ;;  %v339_v30 = vld [vmem:[#allocation2 + $0x38] sm:$0xff] }
 0x224   :  { %v345_v24 = vadd.f32 %v337_v22, %v21_v20  ;;  %v347_v32 = vadd.f32 %v339_v30, %v23_v29 }
 0x226   :  { %v363_v27 = vsel %vm170_vm3, %v345_v24, -inf  ;;  %v369_v33 = vsel %vm170_vm3, %v347_v32, -inf }
 0x2a4   :  { %v356_v57 = vpop.xlane.xlu1 %355 }
 0x2a5   :  { %v374_v58 = vsub.f32 %v342_v45, %v356_v57 }
 0x2a7   :  { %v384_v59 = vmul.f32 1.442695, %v374_v58 }
 0x2a8   :  { %v359_v60 = vpop.xlane.xlu0 %358 }
 0x2a9   :  { %2200 = vpow2.f32 %v384_v59  ;;  %v375_v61 = vsub.f32 %v343_v53, %v359_v60 }
 0x2ab   :  { %v386_v62 = vmul.f32 1.442695, %v375_v61 }
 0x2ad   :  { %2202 = vpow2.f32 %v386_v62 }
 0x2b6   :  { %v2201_v63 = vpop.eup %2200 }
 0x2b7   :  { %v402_v1 = vsel %vm170_vm3, %v2201_v63, 0.0 }
 0x2b8   :  { %403 = vadd.xlane.f32.xlu0 %v402_v1 }
 0x2ba   :  { %v2203_v4 = vpop.eup %2202 }
 0x2bb   :  { %v405_v5 = vsel %vm170_vm3, %v2203_v4, 0.0 }
 0x2bc   :  { %406 = vadd.xlane.f32.xlu1 %v405_v5 }
 0x2c0   :  { %349 = vmax.xlane.f32.xlu1 %v348_v14 }
 0x2c4   :  { %352 = vmax.xlane.f32.xlu1 %v351_v18 }
 0x2c8   :  { %361 = vmax.xlane.f32.xlu1 %v360_v23 }
 0x2cc   :  { %364 = vmax.xlane.f32.xlu1 %v363_v27 }
 0x2ce   :  { %487 = vrot.lane.b32.xlu0 %v2352_v21, %s2286_s18 }
 0x2d0   :  { %367 = vmax.xlane.f32.xlu1 %v366_v31 }
 0x2d4   :  { %370 = vmax.xlane.f32.xlu1 %v369_v33 }
 0x2e5   :  { %437 = vrot.lane.b32.xlu1 %v2352_v21, %s2287_s19 }
 0x341   :  { %v404_v34 = vpop.xlane.xlu0 %403 }
 0x342   :  { %2204 = vrcp.f32 %v404_v34 }
 0x345   :  { %v407_v35 = vpop.xlane.xlu1 %406  ;;  %v488_v36 = vpop.permute.xlu0 %487 }
 0x346   :  { %2206 = vrcp.f32 %v407_v35  ;;  %2037 = vmatpush3.bf16.msra.mxu0 %v488_v36 }
 0x347   :  { %2048 = vmatprep.subr.bf16.mxu0 %v2277_v0 }
 0x349   :  { %v350_v37 = vpop.xlane.xlu1 %349 }
 0x34a   :  { %v372_v38 = vsub.f32 %v340_v6, %v350_v37 }
 0x34c   :  { %v380_v39 = vmul.f32 1.442695, %v372_v38 }
 0x34d   :  { %v353_v40 = vpop.xlane.xlu1 %352 }
 0x34e   :  { %2208 = vpow2.f32 %v380_v39  ;;  %v373_v41 = vsub.f32 %v341_v15, %v353_v40 }
 0x34f   :  { %v2205_v43 = vpop.eup %2204 }
 0x350   :  { %v382_v42 = vmul.f32 1.442695, %v373_v41  ;;  %v430_v48 = vmul.f32 %v2205_v43, %v2201_v63 }
 0x351   :  { %v362_v44 = vpop.xlane.xlu1 %361 }
 0x352   :  { %2210 = vpow2.f32 %v382_v42  ;;  %v376_v45 = vsub.f32 %v344_v19, %v362_v44  ;;  %v535_v19 = vpack.c.bf16 %v37_v17, %v37_v17 }
 0x353   :  { %v2207_v46 = vpop.eup %2206 }
 0x354   :  { %v388_v47 = vmul.f32 1.442695, %v376_v45  ;;  %v431_v49 = vmul.f32 %v2207_v46, %v2203_v4  ;;  %v541_v25 = vsel %vm539_vm4, %v535_v19, 0  ;;  %v36_v46 = vld [vmem:[%s2797_s1 + $0x20] sm:$0xff] }
 0x355   :  { %v365_v50 = vpop.xlane.xlu1 %364 }
 0x356   :  { %2212 = vpow2.f32 %v388_v47  ;;  %v486_v51 = vpack.c.bf16 %v431_v49, %v430_v48  ;;  %v377_v52 = vsub.f32 %v345_v24, %v365_v50  ;;  %v485_v47 = vpack.c.bf16 %v36_v46, %v36_v46  ;;  %v38_v49 = vld [vmem:[%s2797_s1 + $0x30] sm:$0xff] }
 0x358   :  { %2039 = vmatmul.mubr.msk.bf16.vlgmr.msra.gmra.mxu0 %vm170_vm3, %v486_v51  ;;  %v390_v56 = vmul.f32 1.442695, %v377_v52  ;;  %v588_v48 = vsel %vm539_vm4, %v485_v47, 0  ;;  %v680_v51 = vpack.c.bf16 %v38_v49, %v38_v49 }
 0x359   :  { %v368_v53 = vpop.xlane.xlu1 %367  ;;  %2050 = vmatprep.mubr.msk.bf16.mxu0 %vm2278_vm0, %v2277_v0  ;;  %2049 = vmatpush3.bf16.msra.mxu0 %v588_v48 }
 0x35a   :  { %v378_v54 = vsub.f32 %v346_v28, %v368_v53  ;;  %2060 = vmatprep.subr.bf16.mxu0 %v2277_v0 }
 0x35b   :  { %v2209_v55 = vpop.eup %2208 }
 0x35c   :  { %v392_v57 = vmul.f32 1.442695, %v378_v54  ;;  %v396_v58 = vsel %vm170_vm3, %v2209_v55, 0.0 }
 0x35d   :  { %397 = vadd.xlane.f32.xlu0 %v396_v58  ;;  %v371_v59 = vpop.xlane.xlu1 %370 }
 0x35e   :  { %2214 = vpow2.f32 %v392_v57  ;;  %v379_v60 = vsub.f32 %v347_v32, %v371_v59 }
 0x35f   :  { %v2211_v61 = vpop.eup %2210  ;;  %2216 = vpow2.f32 %v390_v56 }
 0x360   :  { %v394_v62 = vmul.f32 1.442695, %v379_v60  ;;  %v399_v63 = vsel %vm170_vm3, %v2211_v61, 0.0 }
 0x361   :  { %400 = vadd.xlane.f32.xlu1 %v399_v63  ;;  %v438_v1 = vpop.permute.xlu1 %437 }
 0x362   :  { %2031 = vmatpush3.bf16.msra.mxu1 %v438_v1  ;;  %2218 = vpow2.f32 %v394_v62 }
 0x363   :  { %v2213_v2 = vpop.eup %2212  ;;  %2042 = vmatprep.subr.bf16.mxu1 %v2277_v0 }
 0x364   :  { %v408_v3 = vsel %vm170_vm3, %v2213_v2, 0.0 }
 0x365   :  { %409 = vadd.xlane.f32.xlu1 %v408_v3 }
 0x36b   :  { %v2215_v4 = vpop.eup %2214 }
 0x36c   :  { %v414_v5 = vsel %vm170_vm3, %v2215_v4, 0.0  ;;  %v2217_v6 = vpop.eup %2216 }
 0x36d   :  { %415 = vadd.xlane.f32.xlu1 %v414_v5  ;;  %v411_v9 = vsel %vm170_vm3, %v2217_v6, 0.0 }
 0x36f   :  { %v2219_v10 = vpop.eup %2218 }
 0x370   :  { %v417_v14 = vsel %vm170_vm3, %v2219_v10, 0.0 }
 0x371   :  { %412 = vadd.xlane.f32.xlu1 %v411_v9 }
 0x373   :  { %632 = vrot.lane.b32.xlu0 %v2352_v21, %s2288_s20 }
 0x375   :  { %418 = vadd.xlane.f32.xlu1 %v417_v14 }
 0x386   :  { %731 = vrot.lane.b32.xlu1 %v2352_v21, %s2289_s21 }
 0x3e6   :  { %v398_v15 = vpop.xlane.xlu0 %397 }
 0x3e7   :  { %2220 = vrcp.f32 %v398_v15 }
 0x3ea   :  { %v401_v16 = vpop.xlane.xlu1 %400  ;;  %v633_v35 = vpop.permute.xlu0 %632 }
 0x3eb   :  { %2222 = vrcp.f32 %v401_v16 }
 0x3ee   :  { %v410_v21 = vpop.xlane.xlu1 %409 }
 0x3f4   :  { %v2221_v18 = vpop.eup %2220 }
 0x3f5   :  { %v428_v22 = vmul.f32 %v2221_v18, %v2209_v55  ;;  %v685_v55 = vsel %vm539_vm4, %v680_v51, 0  ;;  %v47_v51 = vld [vmem:[%s2797_s1 + $0x78] sm:$0xff] }
 0x3f6   :  { %v416_v26 = vpop.xlane.xlu1 %415 }
 0x3f8   :  { %v2223_v20 = vpop.eup %2222 }
 0x3f9   :  { %v429_v23 = vmul.f32 %v2223_v20, %v2211_v61  ;;  %v39_v61 = vld [vmem:[%s2797_s1 + $0x38] sm:$0xff] }
 0x3fa   :  { %v413_v27 = vpop.xlane.xlu1 %412  ;;  %v779_v63 = vpack.c.bf16 %v39_v61, %v39_v61 }
 0x3fb   :  { %v436_v24 = vpack.c.bf16 %v429_v23, %v428_v22  ;;  %2224 = vrcp.f32 %v413_v27  ;;  %v831_v23 = vsub.s32 1, %v2341_v11 }
 0x3fc   :  { %2226 = vrcp.f32 %v410_v21 }
 0x3fd   :  { %2033 = vmatmul.mubr.msk.bf16.vlgmr.msra.gmra.mxu1 %vm170_vm3, %v436_v24  ;;  %v832_v27 = vrot.slane %v2347_v13, %v831_v23 }
 0x3fe   :  { %2043 = vmatpush3.bf16.msra.mxu1 %v541_v25  ;;  %2044 = vmatprep.mubr.msk.bf16.mxu1 %vm2278_vm0, %v2277_v0  ;;  %v419_v28 = vpop.xlane.xlu1 %418 }
 0x3ff   :  { %2054 = vmatprep.subr.bf16.mxu1 %v2277_v0  ;;  %2228 = vrcp.f32 %v419_v28 }
 0x400   :  { %2230 = vrcp.f32 %v416_v26 }
 0x402   :  { %v732_v41 = vpop.permute.xlu1 %731 }
 0x408   :  { %v2225_v33 = vpop.eup %2224 }
 0x409   :  { %v2227_v36 = vpop.eup %2226  ;;  %v433_v37 = vmul.f32 %v2225_v33, %v2217_v6 }
 0x40a   :  { %v432_v38 = vmul.f32 %v2227_v36, %v2213_v2 }
 0x40c   :  { %v631_v39 = vpack.c.bf16 %v433_v37, %v432_v38  ;;  %v2229_v40 = vpop.eup %2228 }
 0x40d   :  { %v2231_v42 = vpop.eup %2230  ;;  %v435_v43 = vmul.f32 %v2229_v40, %v2219_v10 }
 0x40e   :  { %v434_v44 = vmul.f32 %v2231_v42, %v2215_v4  ;;  %v784_v4 = vsel %vm539_vm4, %v779_v63, 0  ;;  %v41_v63 = vld [vmem:[%s2797_s1 + $0x48] sm:$0xff] }
 0x410   :  { %v730_v45 = vpack.c.bf16 %v435_v43, %v434_v44 }
 0x418   :  { %v527_v29 = vpop.f32.mrf.mxu0 }
 0x41a   :  { %v2040_v30 = vpop.f32.mrf.mxu0 }
 0x41c   :  { %v530_v31 = vpop.f32.mrf.mxu0 }
 0x41d   :  { %v534_v32 = vpack.c.bf16 %v530_v31, %v527_v29 }
 0x41e   :  { %v2041_v34 = vpop.f32.mrf.mxu0 }
 0x41f   :  { %2045 = vmatmul.mubr.msk.bf16.vlgmr.msra.gmra.mxu1 %vm122_vm2, %v534_v32 }
 0x420   :  { %2055 = vmatpush3.bf16.msra.mxu1 %v633_v35  ;;  %2056 = vmatprep.mubr.msk.bf16.mxu1 %vm2278_vm0, %v2277_v0 }
 0x421   :  { %2066 = vmatprep.subr.bf16.mxu1 %v2277_v0 }
 0x427   :  { %2057 = vmatmul.mubr.msk.bf16.vlgmr.msra.gmra.mxu1 %vm170_vm3, %v631_v39 }
 0x428   :  { %2067 = vmatpush3.bf16.msra.mxu1 %v732_v41  ;;  %2068 = vmatprep.mubr.msk.bf16.mxu1 %vm2278_vm0, %v2277_v0 }
 0x429   :  { %2078 = vmatprep.subr.bf16.mxu1 %v2277_v0 }
 0x42f   :  { %2069 = vmatmul.mubr.msk.bf16.vlgmr.msra.gmra.mxu1 %vm170_vm3, %v730_v45 }
 0x430   :  { %2082 = vmatprep.mubr.msk.bf16.mxu1 %vm2278_vm0, %v2277_v0 }
 0x4bd   :  { %v477_v50 = vpop.f32.mrf.mxu1 }
 0x4bf   :  { %v2034_v52 = vpop.f32.mrf.mxu1 }
 0x4c1   :  { %v480_v53 = vpop.f32.mrf.mxu1 }
 0x4c2   :  { %v484_v54 = vpack.c.bf16 %v480_v53, %v477_v50  ;;  %v44_v53 = vld [vmem:[%s2797_s1 + $0x60] sm:$0xff] }
 0x4c3   :  { %v2035_v56 = vpop.f32.mrf.mxu1 }
 0x4c4   :  { %2051 = vmatmul.mubr.msk.bf16.vlgmr.msra.gmra.mxu0 %vm122_vm2, %v484_v54  ;;  %v45_v54 = vld [vmem:[%s2797_s1 + $0x68] sm:$0xff]  ;;  %v14_v56 = vld [vmem:[%s2798_s0 + $0x10] sm:$0xff] }
 0x4c5   :  { %2061 = vmatpush3.bf16.msra.mxu0 %v685_v55  ;;  %2062 = vmatprep.mubr.msk.bf16.mxu0 %vm2278_vm0, %v2277_v0  ;;  %v927_v55 = vpack.c.bf16 %v45_v54, %v44_v53 }
 0x4c6   :  { %2072 = vmatprep.subr.bf16.mxu0 %v2277_v0 }
 0x4df   :  { %v577_v57 = vpop.f32.mrf.mxu1 }
 0x4e1   :  { %v2046_v58 = vpop.f32.mrf.mxu1 }
 0x4e3   :  { %v580_v59 = vpop.f32.mrf.mxu1 }
 0x4e5   :  { %v2047_v60 = vpop.f32.mrf.mxu1 }
 0x4e6   :  { %v43_v60 = vld [vmem:[%s2797_s1 + $0x58] sm:$0xff] }
 0x4e7   :  { %v672_v62 = vpop.f32.mrf.mxu1 }
 0x4e9   :  { %v2058_v1 = vpop.f32.mrf.mxu1 }
 0x4eb   :  { %v675_v2 = vpop.f32.mrf.mxu1 }
 0x4ec   :  { %v679_v3 = vpack.c.bf16 %v675_v2, %v672_v62  ;;  %v40_v62 = vld [vmem:[%s2797_s1 + $0x40] sm:$0xff] }
 0x4ed   :  { %v2059_v5 = vpop.f32.mrf.mxu1  ;;  %v876_v1 = vpack.c.bf16 %v41_v63, %v40_v62  ;;  %v26_v63 = vld [vmem:[%s2798_s0 + $0x70] sm:$0xff] }
 0x4ee   :  { %2063 = vmatmul.mubr.msk.bf16.vlgmr.msra.gmra.mxu0 %vm122_vm2, %v679_v3 }
 0x4ef   :  { %2073 = vmatpush3.bf16.msra.mxu0 %v784_v4  ;;  %v771_v6 = vpop.f32.mrf.mxu1  ;;  %2074 = vmatprep.mubr.msk.bf16.mxu0 %vm2278_vm0, %v2277_v0 }
 0x4f0   :  { %2086 = vmatprep.subr.bf16.mxu0 %v2277_v0 }
 0x4f1   :  { %v2070_v9 = vpop.f32.mrf.mxu1 }
 0x4f3   :  { %v774_v10 = vpop.f32.mrf.mxu1 }
 0x4f4   :  { %v778_v14 = vpack.c.bf16 %v774_v10, %v771_v6  ;;  %v866_v10 = vsub.s32 7, %v2341_v11 }
 0x4f5   :  { %v2071_v15 = vpop.f32.mrf.mxu1 }
 0x4f6   :  { %2075 = vmatmul.mubr.msk.bf16.vlgmr.msra.gmra.mxu0 %vm122_vm2, %v778_v14 }
 0x4f7   :  { %2090 = vmatprep.mubr.msk.bf16.mxu0 %vm2278_vm0, %v2277_v0 }
 0x584   :  { %v624_v16 = vpop.f32.mrf.mxu0 }
 0x585   :  { %v625_v25 = vadd.f32 %v624_v16, %v577_v57  ;;  %v15_v57 = vld [vmem:[%s2798_s0 + $0x18] sm:$0xff]  ;;  %v867_v16 = vrot.slane %v2347_v13, %v866_v10 }
 0x586   :  { %v2052_v17 = vpop.f32.mrf.mxu0  ;;  %v929_v58 = vpack.c.bf16 %v15_v57, %v14_v56 }
 0x587   :  { %v2541_v17 = vld [vmem:[%s2797_s1 + $0x108] sm:$0xff] }
 0x588   :  { %v627_v18 = vpop.f32.mrf.mxu0 }
 0x589   :  { %v628_v29 = vadd.f32 %v627_v18, %v580_v59  ;;  %v42_v59 = vld [vmem:[%s2797_s1 + $0x50] sm:$0xff] }
 0x58a   :  { %v2053_v19 = vpop.f32.mrf.mxu0  ;;  %v877_v61 = vpack.c.bf16 %v43_v60, %v42_v59 }
 0x58b   :  { %v873_v19 = vrot.slane %v2541_v17, %v71_v12 }
 0x58c   :  { %2079 = vmatpush3.bf16.msra.mxu1 %v877_v61 }
 0x58d   :  { %2080 = vmatprep.subr.bf16.mxu1 %v2277_v0 }
 0x590   :  { %2081 = vmatpush3.bf16.msra.mxu1 %v876_v1 }
 0x591   :  { %2094 = vmatprep.subr.bf16.mxu1 %v2277_v0 }
 0x5ae   :  { %v721_v20 = vpop.f32.mrf.mxu0 }
 0x5af   :  { %v728_v26 = vadd.f32 %v721_v20, %v625_v25 }
 0x5b0   :  { %v2064_v22 = vpop.f32.mrf.mxu0 }
 0x5b2   :  { %v724_v24 = vpop.f32.mrf.mxu0 }
 0x5b3   :  { %v729_v32 = vadd.f32 %v724_v24, %v628_v29 }
 0x5b4   :  { %v2065_v21 = vpop.f32.mrf.mxu0 }
 0x5b6   :  { %v820_v28 = vpop.f32.mrf.mxu0 }
 0x5b7   :  { %v827_v30 = vadd.f32 %v820_v28, %v728_v26 }
 0x5b8   :  { %v2076_v31 = vpop.f32.mrf.mxu0 }
 0x5b9   :  { %v833_v33 = vadd.f32 %v832_v27, %v827_v30 }
 0x5ba   :  { %v823_v34 = vpop.f32.mrf.mxu0 }
 0x5bb   :  { %v828_v35 = vadd.f32 %v823_v34, %v729_v32  ;;  %v835_v36 = vadd.f32 %v833_v33, %v2327_v7 }
 0x5bc   :  { %v2077_v37 = vpop.f32.mrf.mxu0 }
 0x5bd   :  { %v834_v38 = vadd.f32 %v832_v27, %v828_v35  ;;  %v837_v39 = vsel %vm73_vm1, %v835_v36, 0.0  ;;  %v932_v27 = vsub.s32 3, %v2341_v11 }
 0x5be   :  { %838 = vadd.xlane.f32.xlu1 %v837_v39 }
 0x5bf   :  { %v836_v40 = vadd.f32 %v834_v38, %v2332_v8  ;;  %v46_v8 = vld [vmem:[%s2797_s1 + $0x70] sm:$0xff]  ;;  %v933_v12 = vrot.slane %v2347_v13, %v932_v27  ;;  %v881_v38 = vsub.s32 2, %v2341_v11 }
 0x5c0   :  { %v928_v52 = vpack.c.bf16 %v47_v51, %v46_v8 }
 0x5c1   :  { %v840_v41 = vsel %vm73_vm1, %v836_v40, 0.0 }
 0x5c2   :  { %841 = vadd.xlane.f32.xlu0 %v840_v41  ;;  %2087 = vmatpush3.bf16.msra.mxu0 %v928_v52 }
 0x5c3   :  { %2088 = vmatprep.subr.bf16.mxu0 %v2277_v0 }
 0x5c6   :  { %2089 = vmatpush3.bf16.msra.mxu0 %v927_v55 }
 0x5c7   :  { %2100 = vmatprep.subr.bf16.mxu0 %v2277_v0 }
 0x5c9   :  { %2091 = vmatmul.mubr.msk.bf16.vlgmr.msra.gmra.mxu0 %vm73_vm1, %v929_v58 }
 0x5ca   :  { %2102 = vmatprep.mubr.msk.bf16.mxu0 %vm2278_vm0, %v2277_v0 }
 0x647   :  { %v839_v42 = vpop.xlane.xlu1 %838 }
 0x648   :  { %v844_v43 = vmul.f32 0.03125, %v839_v42 }
 0x64a   :  { %v846_v44 = vsub.f32 %v835_v36, %v844_v43 }
 0x64b   :  { %v842_v45 = vpop.xlane.xlu0 %841 }
 0x64c   :  { %v845_v46 = vmul.f32 0.03125, %v842_v45  ;;  %v848_v47 = vmul.f32 %v846_v44, %v846_v44 }
 0x64e   :  { %v847_v48 = vsub.f32 %v836_v40, %v845_v46  ;;  %v850_v49 = vsel %vm73_vm1, %v848_v47, 0.0  ;;  %v882_v40 = vrot.slane %v2347_v13, %v881_v38 }
 0x64f   :  { %851 = vadd.xlane.f32.xlu1 %v850_v49 }
 0x650   :  { %v849_v7 = vmul.f32 %v847_v48, %v847_v48 }
 0x652   :  { %v853_v50 = vsel %vm73_vm1, %v849_v7, 0.0 }
 0x653   :  { %854 = vadd.xlane.f32.xlu0 %v853_v50 }
 0x689   :  { %v971_v28 = vpop.f32.mrf.mxu0 }
 0x68a   :  { %v972_v30 = vadd.f32 %v971_v28, %v933_v12 }
 0x68b   :  { %v2092_v29 = vpop.f32.mrf.mxu0 }
 0x68d   :  { %v974_v31 = vpop.f32.mrf.mxu0 }
 0x68e   :  { %v975_v32 = vadd.f32 %v974_v31, %v933_v12 }
 0x68f   :  { %v2093_v33 = vpop.f32.mrf.mxu0 }
 0x690   :  { %v2559_v34 = vpack.c.bf16 %v975_v32, %v972_v30 }
 0x692   :  { %1033 = vrot.lane.b32.xlu1 %v2559_v34, %s2282_s26  ;;  %v984_v35 = vsel %vm122_vm2, %v2559_v34, 0 }
 0x696   :  { %1086 = vrot.lane.b32.xlu1 %v2559_v34, %s2284_s28 }
 0x6d8   :  { %v852_v2 = vpop.xlane.xlu1 %851 }
 0x6d9   :  { %v856_v3 = vmul.f32 0.03125, %v852_v2 }
 0x6db   :  { %v858_v4 = vadd.f32 1e-05, %v856_v3  ;;  %v27_v3 = vld [vmem:[%s2798_s0 + $0x78] sm:$0xff] }
 0x6dc   :  { %v855_v5 = vpop.xlane.xlu0 %854 }
 0x6dd   :  { %2232 = vrsqrt.f32 %v858_v4  ;;  %v857_v6 = vmul.f32 0.03125, %v855_v5 }
 0x6df   :  { %v859_v9 = vadd.f32 1e-05, %v857_v6 }
 0x6e1   :  { %2234 = vrsqrt.f32 %v859_v9 }
 0x6ea   :  { %v2233_v14 = vpop.eup %2232 }
 0x6eb   :  { %v862_v15 = vmul.f32 %v2233_v14, %v846_v44 }
 0x6ed   :  { %v868_v22 = vmul.f32 %v867_v16, %v862_v15 }
 0x6ee   :  { %v2235_v18 = vpop.eup %2234 }
 0x6ef   :  { %v863_v20 = vmul.f32 %v2235_v18, %v847_v48  ;;  %v2546_v25 = vadd.f32 %v873_v19, %v868_v22  ;;  %v30_v18 = vld [vmem:[%s2798_s0 + $0x90] sm:$0xff] }
 0x6f1   :  { %v869_v24 = vmul.f32 %v867_v16, %v863_v20 }
 0x6f3   :  { %v2548_v21 = vadd.f32 %v873_v19, %v869_v24 }
 0x6f5   :  { %v878_v26 = vpack.c.bf16 %v2548_v21, %v2546_v25 }
 0x6f7   :  { %2083 = vmatmul.mubr.msk.bf16.vlgmr.msra.gmra.mxu1 %vm73_vm1, %v878_v26 }
 0x6f8   :  { %2096 = vmatprep.mubr.msk.bf16.mxu1 %vm2278_vm0, %v2277_v0  ;;  %2095 = vmatpush3.bf16.xpose.msra.mxu1 %v984_v35  ;;  %v24_v35 = vld [vmem:[%s2798_s0 + $0x60] sm:$0xff] }
 0x6f9   :  { %2106 = vmatprep.subr.bf16.mxu1 %v2277_v0 }
 0x704   :  { %v1034_v36 = vpop.permute.xlu1 %1033 }
 0x705   :  { %v1039_v37 = vsel %vm122_vm2, %v1034_v36, 0 }
 0x706   :  { %2101 = vmatpush3.bf16.xpose.msra.mxu0 %v1039_v37 }
 0x707   :  { %2112 = vmatprep.subr.bf16.mxu0 %v2277_v0 }
 0x708   :  { %v1087_v45 = vpop.permute.xlu1 %1086 }
 0x709   :  { %v1092_v48 = vsel %vm122_vm2, %v1087_v45, 0  ;;  %v28_v45 = vld [vmem:[%s2798_s0 + $0x80] sm:$0xff] }
 0x7b7   :  { %v920_v39 = vpop.f32.mrf.mxu1 }
 0x7b8   :  { %v921_v43 = vadd.f32 %v920_v39, %v882_v40 }
 0x7b9   :  { %v2084_v41 = vpop.f32.mrf.mxu1 }
 0x7ba   :  { %v25_v41 = vld [vmem:[%s2798_s0 + $0x68] sm:$0xff] }
 0x7bb   :  { %v923_v42 = vpop.f32.mrf.mxu1 }
 0x7bc   :  { %v924_v44 = vadd.f32 %v923_v42, %v882_v40 }
 0x7bd   :  { %v2085_v46 = vpop.f32.mrf.mxu1 }
 0x7be   :  { %v978_v47 = vpack.c.bf16 %v924_v44, %v921_v43 }
 0x7c0   :  { %1084 = vrot.lane.b32.xlu1 %v978_v47, %s2284_s28  ;;  %1030 = vrot.lane.b32.xlu0 %v978_v47, %s2282_s26 }
 0x7c1   :  { %2097 = vmatmul.mubr.msk.bf16.vlgmr.msra.gmra.mxu1 %vm122_vm2, %v978_v47 }
 0x7c2   :  { %2107 = vmatpush3.bf16.xpose.msra.mxu1 %v1092_v48  ;;  %2108 = vmatprep.mubr.msk.bf16.mxu1 %vm2278_vm0, %v2277_v0 }
 0x7c3   :  { %2118 = vmatprep.subr.bf16.mxu1 %v2277_v0 }
 0x7c4   :  { %1139 = vrot.lane.b32.xlu1 %v2559_v34, %s2285_s29  ;;  %1137 = vrot.lane.b32.xlu0 %v978_v47, %s2285_s29 }
 0x832   :  { %v1085_v13 = vpop.permute.xlu1 %1084  ;;  %v1031_v49 = vpop.permute.xlu0 %1030 }
 0x833   :  { %2103 = vmatmul.mubr.msk.bf16.vlgmr.msra.gmra.mxu0 %vm122_vm2, %v1031_v49  ;;  %2109 = vmatmul.mubr.msk.bf16.vlgmr.msra.gmra.mxu1 %vm122_vm2, %v1085_v13  ;;  %v29_v13 = vld [vmem:[%s2798_s0 + $0x88] sm:$0xff] }
 0x834   :  { %2114 = vmatprep.mubr.msk.bf16.mxu0 %vm2278_vm0, %v2277_v0  ;;  %2120 = vmatprep.mubr.msk.bf16.mxu1 %vm2278_vm0, %v2277_v0 }
 0x836   :  { %v1140_v7 = vpop.permute.xlu1 %1139  ;;  %v1138_v8 = vpop.permute.xlu0 %1137 }
 0x837   :  { %v1145_v50 = vsel %vm122_vm2, %v1140_v7, 0 }
 0x838   :  { %2113 = vmatpush3.bf16.xpose.msra.mxu0 %v1145_v50 }
 0x839   :  { %2124 = vmatprep.subr.bf16.mxu0 %v2277_v0 }
 0x83f   :  { %2115 = vmatmul.mubr.msk.bf16.vlgmr.msra.gmra.mxu0 %vm122_vm2, %v1138_v8  ;;  %v31_v8 = vld [vmem:[%s2798_s0 + $0x98] sm:$0xff] }
 0x840   :  { %2126 = vmatprep.mubr.msk.bf16.mxu0 %vm2278_vm0, %v2277_v0 }
 0x881   :  { %v1020_v51 = vpop.f32.mrf.mxu1 }
 0x882   :  { %1027 = vst.msk [vmem:[#allocation2] sm:$0xff] %vm170_vm3, %v1020_v51 }
 0x883   :  { %v2098_v52 = vpop.f32.mrf.mxu1 }
 0x885   :  { %v1023_v53 = vpop.f32.mrf.mxu1 }
 0x886   :  { %1028 = vst.msk [vmem:[#allocation2 + $0x8] sm:$0xff] %vm170_vm3, %v1023_v53 }
 0x887   :  { %v2099_v54 = vpop.f32.mrf.mxu1 }
 0x889   :  { %v1190_v36 = vld [vmem:[#allocation2] sm:$0xff] }
 0x88a   :  { %v1198_v40 = vadd.f32 %v1190_v36, %v24_v35 }
 0x88c   :  { %v1206_v43 = vsel %vm170_vm3, %v1198_v40, -inf }
 0x88d   :  { %v1191_v42 = vld [vmem:[#allocation2 + $0x8] sm:$0xff] }
 0x88e   :  { %v1199_v44 = vadd.f32 %v1191_v42, %v25_v41 }
 0x890   :  { %v1209_v47 = vsel %vm170_vm3, %v1199_v44, -inf }
 0x8f3   :  { %v1075_v55 = vpop.f32.mrf.mxu0  ;;  %v1128_v56 = vpop.f32.mrf.mxu1 }
 0x8f4   :  { %1082 = vst.msk [vmem:[#allocation2 + $0x10] sm:$0xff] %vm170_vm3, %v1075_v55  ;;  %1135 = vst.msk [vmem:[#allocation2 + $0x20] sm:$0xff] %vm170_vm3, %v1128_v56 }
 0x8f5   :  { %v2104_v57 = vpop.f32.mrf.mxu0  ;;  %v2110_v58 = vpop.f32.mrf.mxu1 }
 0x8f7   :  { %v1078_v59 = vpop.f32.mrf.mxu0  ;;  %v1131_v60 = vpop.f32.mrf.mxu1 }
 0x8f8   :  { %1083 = vst.msk [vmem:[#allocation2 + $0x18] sm:$0xff] %vm170_vm3, %v1078_v59  ;;  %1136 = vst.msk [vmem:[#allocation2 + $0x28] sm:$0xff] %vm170_vm3, %v1131_v60 }
 0x8f9   :  { %v2105_v61 = vpop.f32.mrf.mxu0  ;;  %v2111_v62 = vpop.f32.mrf.mxu1 }
 0x8fb   :  { %v1192_v1 = vld [vmem:[#allocation2 + $0x10] sm:$0xff]  ;;  %v1194_v46 = vld [vmem:[#allocation2 + $0x20] sm:$0xff] }
 0x8fc   :  { %v1200_v2 = vadd.f32 %v1192_v1, %v26_v63  ;;  %v1202_v48 = vadd.f32 %v1194_v46, %v28_v45 }
 0x8fe   :  { %v1212_v4 = vsel %vm170_vm3, %v1200_v2, -inf  ;;  %v1218_v7 = vsel %vm170_vm3, %v1202_v48, -inf }
 0x8ff   :  { %1213 = vmax.xlane.f32.xlu1 %v1212_v4  ;;  %v1181_v5 = vpop.f32.mrf.mxu0  ;;  %v1193_v6 = vld [vmem:[#allocation2 + $0x18] sm:$0xff]  ;;  %v1195_v49 = vld [vmem:[#allocation2 + $0x28] sm:$0xff] }
 0x900   :  { %1188 = vst.msk [vmem:[#allocation2 + $0x30] sm:$0xff] %vm170_vm3, %v1181_v5  ;;  %v1201_v9 = vadd.f32 %v1193_v6, %v27_v3  ;;  %v1203_v50 = vadd.f32 %v1195_v49, %v29_v13 }
 0x901   :  { %v2116_v10 = vpop.f32.mrf.mxu0 }
 0x902   :  { %v1215_v14 = vsel %vm170_vm3, %v1201_v9, -inf  ;;  %v1221_v52 = vsel %vm170_vm3, %v1203_v50, -inf }
 0x903   :  { %1216 = vmax.xlane.f32.xlu0 %v1215_v14  ;;  %v1184_v15 = vpop.f32.mrf.mxu0 }
 0x904   :  { %1189 = vst.msk [vmem:[#allocation2 + $0x38] sm:$0xff] %vm170_vm3, %v1184_v15 }
 0x905   :  { %v2117_v16 = vpop.f32.mrf.mxu0 }
 0x907   :  { %v1196_v19 = vld [vmem:[#allocation2 + $0x30] sm:$0xff] }
 0x908   :  { %v2616_v20 = vadd.f32 %v1196_v19, %v30_v18 }
 0x90a   :  { %v1224_v22 = vsel %vm170_vm3, %v2616_v20, -inf }
 0x90b   :  { %v1197_v51 = vld [vmem:[#allocation2 + $0x38] sm:$0xff] }
 0x90c   :  { %v1205_v53 = vadd.f32 %v1197_v51, %v31_v8 }
 0x90e   :  { %v1227_v54 = vsel %vm170_vm3, %v1205_v53, -inf }
 0x910   :  { %1345 = vrot.lane.b32.xlu1 %v2559_v34, %s2280_s24 }
 0x934   :  { %1225 = vmax.xlane.f32.xlu1 %v1224_v22 }
 0x945   :  { %1491 = vrot.lane.b32.xlu1 %v2559_v34, %s2281_s25 }
 0x988   :  { %v1214_v24 = vpop.xlane.xlu1 %1213 }
 0x989   :  { %v1232_v26 = vsub.f32 %v1200_v2, %v1214_v24 }
 0x98b   :  { %v1242_v12 = vmul.f32 1.442695, %v1232_v26 }
 0x98c   :  { %v1346_v28 = vpop.permute.xlu1 %1345  ;;  %v1217_v29 = vpop.xlane.xlu0 %1216 }
 0x98d   :  { %2236 = vpow2.f32 %v1242_v12  ;;  %v1233_v30 = vsub.f32 %v1201_v9, %v1217_v29  ;;  %2125 = vmatpush3.bf16.msra.mxu0 %v1346_v28 }
 0x98e   :  { %2136 = vmatprep.subr.bf16.mxu0 %v2277_v0 }
 0x98f   :  { %v1244_v31 = vmul.f32 1.442695, %v1233_v30 }
 0x991   :  { %2238 = vpow2.f32 %v1244_v31 }
 0x99a   :  { %v2237_v32 = vpop.eup %2236 }
 0x99b   :  { %v1260_v33 = vsel %vm170_vm3, %v2237_v32, 0.0 }
 0x99c   :  { %1261 = vadd.xlane.f32.xlu0 %v1260_v33 }
 0x99e   :  { %v2239_v37 = vpop.eup %2238 }
 0x99f   :  { %v1263_v39 = vsel %vm170_vm3, %v2239_v37, 0.0 }
 0x9a0   :  { %1264 = vadd.xlane.f32.xlu0 %v1263_v39 }
 0x9a4   :  { %1207 = vmax.xlane.f32.xlu0 %v1206_v43 }
 0x9a8   :  { %1210 = vmax.xlane.f32.xlu0 %v1209_v47 }
 0x9ac   :  { %1219 = vmax.xlane.f32.xlu0 %v1218_v7 }
 0x9b0   :  { %1222 = vmax.xlane.f32.xlu0 %v1221_v52 }
 0x9b4   :  { %1228 = vmax.xlane.f32.xlu0 %v1227_v54 }
 0x9bd   :  { %v1226_v26 = vpop.xlane.xlu1 %1225 }
 0x9be   :  { %v1236_v12 = vsub.f32 %v2616_v20, %v1226_v26 }
 0x9c0   :  { %v1250_v30 = vmul.f32 1.442695, %v1236_v12 }
 0xa25   :  { %v1262_v55 = vpop.xlane.xlu0 %1261 }
 0xa26   :  { %2240 = vrcp.f32 %v1262_v55 }
 0xa29   :  { %v1265_v56 = vpop.xlane.xlu0 %1264 }
 0xa2a   :  { %2242 = vrcp.f32 %v1265_v56 }
 0xa2d   :  { %v1208_v57 = vpop.xlane.xlu0 %1207 }
 0xa2e   :  { %v1230_v58 = vsub.f32 %v1198_v40, %v1208_v57  ;;  %v1492_v57 = vpop.permute.xlu1 %1491 }
 0xa30   :  { %v1238_v59 = vmul.f32 1.442695, %v1230_v58 }
 0xa31   :  { %v1211_v60 = vpop.xlane.xlu0 %1210 }
 0xa32   :  { %2244 = vpow2.f32 %v1238_v59  ;;  %v1231_v61 = vsub.f32 %v1199_v44, %v1211_v60  ;;  %v49_v44 = vld [vmem:[%s2797_s1 + $0x88] sm:$0xff] }
 0xa33   :  { %v2241_v63 = vpop.eup %2240  ;;  %v1393_v46 = vpack.c.bf16 %v49_v44, %v49_v44 }
 0xa34   :  { %v1240_v62 = vmul.f32 1.442695, %v1231_v61  ;;  %v1288_v5 = vmul.f32 %v2241_v63, %v2237_v32 }
 0xa35   :  { %v1220_v1 = vpop.xlane.xlu0 %1219  ;;  %v1398_v49 = vsel %vm539_vm4, %v1393_v46, 0 }
 0xa36   :  { %2246 = vpow2.f32 %v1240_v62  ;;  %v1234_v2 = vsub.f32 %v1202_v48, %v1220_v1 }
 0xa37   :  { %v2243_v3 = vpop.eup %2242 }
 0xa38   :  { %v1246_v4 = vmul.f32 1.442695, %v1234_v2  ;;  %v2645_v6 = vmul.f32 %v2243_v3, %v2239_v37 }
 0xa39   :  { %v1223_v22 = vpop.xlane.xlu0 %1222 }
 0xa3a   :  { %2248 = vpow2.f32 %v1246_v4  ;;  %v1344_v9 = vpack.c.bf16 %v2645_v6, %v1288_v5  ;;  %v1235_v24 = vsub.f32 %v1203_v50, %v1223_v22  ;;  %v50_v22 = vld [vmem:[%s2797_s1 + $0x90] sm:$0xff] }
 0xa3b   :  { %v1539_v26 = vpack.c.bf16 %v50_v22, %v50_v22 }
 0xa3c   :  { %2127 = vmatmul.mubr.msk.bf16.vlgmr.msra.gmra.mxu0 %vm170_vm3, %v1344_v9  ;;  %v1248_v28 = vmul.f32 1.442695, %v1235_v24 }
 0xa3d   :  { %2138 = vmatprep.mubr.msk.bf16.mxu0 %vm2278_vm0, %v2277_v0  ;;  %v1229_v29 = vpop.xlane.xlu0 %1228 }
 0xa3e   :  { %2250 = vpow2.f32 %v1248_v28  ;;  %v1237_v31 = vsub.f32 %v1205_v53, %v1229_v29 }
 0xa3f   :  { %v2245_v10 = vpop.eup %2244  ;;  %2252 = vpow2.f32 %v1250_v30  ;;  %v1544_v30 = vsel %vm539_vm4, %v1539_v26, 0 }
 0xa40   :  { %v1254_v14 = vsel %vm170_vm3, %v2245_v10, 0.0  ;;  %v1252_v32 = vmul.f32 1.442695, %v1237_v31 }
 0xa41   :  { %1255 = vadd.xlane.f32.xlu0 %v1254_v14 }
 0xa42   :  { %2254 = vpow2.f32 %v1252_v32 }
 0xa43   :  { %v2247_v15 = vpop.eup %2246 }
 0xa44   :  { %v1257_v16 = vsel %vm170_vm3, %v2247_v15, 0.0 }
 0xa45   :  { %1258 = vadd.xlane.f32.xlu0 %v1257_v16 }
 0xa47   :  { %v2249_v18 = vpop.eup %2248 }
 0xa48   :  { %v1266_v19 = vsel %vm170_vm3, %v2249_v18, 0.0 }
 0xa49   :  { %1267 = vadd.xlane.f32.xlu0 %v1266_v19 }
 0xa4b   :  { %v2251_v33 = vpop.eup %2250 }
 0xa4c   :  { %v1269_v35 = vsel %vm170_vm3, %v2251_v33, 0.0  ;;  %v2253_v36 = vpop.eup %2252 }
 0xa4d   :  { %v1272_v37 = vsel %vm170_vm3, %v2253_v36, 0.0 }
 0xa4f   :  { %v2255_v39 = vpop.eup %2254 }
 0xa50   :  { %v1275_v40 = vsel %vm170_vm3, %v2255_v39, 0.0 }
 0xa5f   :  { %1295 = vrot.lane.b32.xlu0 %v2559_v34, %s2279_s23 }
 0xa7e   :  { %1270 = vadd.xlane.f32.xlu0 %v1269_v35 }
 0xa82   :  { %1273 = vadd.xlane.f32.xlu0 %v1272_v37  ;;  %v51_v37 = vld [vmem:[%s2797_s1 + $0x98] sm:$0xff] }
 0xa86   :  { %1276 = vadd.xlane.f32.xlu0 %v1275_v40  ;;  %v1640_v40 = vpack.c.bf16 %v51_v37, %v51_v37  ;;  %v62_v37 = vld [vmem:[%s2797_s1 + $0xf0] sm:$0xff] }
 0xa9c   :  { %1592 = vrot.lane.b32.xlu0 %v2559_v34, %s2283_s27 }
 0xaca   :  { %v1256_v20 = vpop.xlane.xlu0 %1255 }
 0xacb   :  { %2256 = vrcp.f32 %v1256_v20 }
 0xace   :  { %v1259_v41 = vpop.xlane.xlu0 %1258 }
 0xacf   :  { %2258 = vrcp.f32 %v1259_v41 }
 0xad2   :  { %v1268_v42 = vpop.xlane.xlu0 %1267 }
 0xad3   :  { %2260 = vrcp.f32 %v1268_v42 }
 0xad6   :  { %v1296_v43 = vpop.permute.xlu0 %1295 }
 0xad7   :  { %2119 = vmatpush3.bf16.msra.mxu1 %v1296_v43  ;;  %v1645_v43 = vsel %vm539_vm4, %v1640_v40, 0 }
 0xad8   :  { %2130 = vmatprep.subr.bf16.mxu1 %v2277_v0  ;;  %v2257_v45 = vpop.eup %2256 }
 0xad9   :  { %v1286_v48 = vmul.f32 %v2257_v45, %v2245_v10 }
 0xadb   :  { %v1488_v8 = vadd.f32 %v1288_v5, %v1286_v48 }
 0xadc   :  { %v2259_v47 = vpop.eup %2258 }
 0xadd   :  { %v1287_v13 = vmul.f32 %v2259_v47, %v2247_v15 }
 0xadf   :  { %v1294_v34 = vpack.c.bf16 %v1287_v13, %v1286_v48  ;;  %v1489_v63 = vadd.f32 %v2645_v6, %v1287_v13  ;;  %v48_v6 = vld [vmem:[%s2797_s1 + $0x80] sm:$0xff] }
 0xae0   :  { %v2261_v7 = vpop.eup %2260 }
 0xae1   :  { %2121 = vmatmul.mubr.msk.bf16.vlgmr.msra.gmra.mxu1 %vm170_vm3, %v1294_v34  ;;  %v1290_v50 = vmul.f32 %v2261_v7, %v2249_v18  ;;  %v1343_v18 = vpack.c.bf16 %v48_v6, %v48_v6 }
 0xae2   :  { %2131 = vmatpush3.bf16.msra.mxu1 %v1398_v49  ;;  %2132 = vmatprep.mubr.msk.bf16.mxu1 %vm2278_vm0, %v2277_v0 }
 0xae3   :  { %2142 = vmatprep.subr.bf16.mxu1 %v2277_v0  ;;  %v1589_v51 = vadd.f32 %v1488_v8, %v1290_v50  ;;  %v1445_v19 = vsel %vm539_vm4, %v1343_v18, 0 }
 0xae4   :  { %2137 = vmatpush3.bf16.msra.mxu0 %v1445_v19 }
 0xae5   :  { %2148 = vmatprep.subr.bf16.mxu0 %v2277_v0 }
 0xafc   :  { %v1385_v52 = vpop.f32.mrf.mxu0 }
 0xafe   :  { %v2128_v53 = vpop.f32.mrf.mxu0 }
 0xb00   :  { %v1388_v54 = vpop.f32.mrf.mxu0 }
 0xb01   :  { %v1392_v55 = vpack.c.bf16 %v1388_v54, %v1385_v52  ;;  %v1694_v52 = vsub.s32 4, %v2341_v11 }
 0xb02   :  { %v2129_v56 = vpop.f32.mrf.mxu0 }
 0xb03   :  { %2133 = vmatmul.mubr.msk.bf16.vlgmr.msra.gmra.mxu1 %vm122_vm2, %v1392_v55 }
 0xb04   :  { %2143 = vmatpush3.bf16.msra.mxu1 %v1492_v57  ;;  %2144 = vmatprep.mubr.msk.bf16.mxu1 %vm2278_vm0, %v2277_v0  ;;  %v2715_v57 = vld [vmem:[%s2797_s1 + $0x100] sm:$0xff] }
 0xb05   :  { %2154 = vmatprep.subr.bf16.mxu1 %v2277_v0 }
 0xb07   :  { %v1271_v58 = vpop.xlane.xlu0 %1270 }
 0xb08   :  { %2262 = vrcp.f32 %v1271_v58  ;;  %v1695_v58 = vrot.slane %v2715_v57, %v1694_v52 }
 0xb0b   :  { %v1274_v59 = vpop.xlane.xlu0 %1273 }
 0xb0c   :  { %2264 = vrcp.f32 %v1274_v59 }
 0xb0f   :  { %v1277_v60 = vpop.xlane.xlu0 %1276 }
 0xb10   :  { %2266 = vrcp.f32 %v1277_v60 }
 0xb13   :  { %v1593_v4 = vpop.permute.xlu0 %1592 }
 0xb15   :  { %v2263_v61 = vpop.eup %2262 }
 0xb16   :  { %v1291_v62 = vmul.f32 %v2263_v61, %v2251_v33 }
 0xb18   :  { %v1490_v1 = vpack.c.bf16 %v1291_v62, %v1290_v50  ;;  %v1590_v2 = vadd.f32 %v1489_v63, %v1291_v62 }
 0xb19   :  { %v2265_v3 = vpop.eup %2264 }
 0xb1a   :  { %2145 = vmatmul.mubr.msk.bf16.vlgmr.msra.gmra.mxu1 %vm170_vm3, %v1490_v1  ;;  %v1292_v5 = vmul.f32 %v2265_v3, %v2253_v36 }
 0xb1b   :  { %2155 = vmatpush3.bf16.msra.mxu1 %v1593_v4  ;;  %2156 = vmatprep.mubr.msk.bf16.mxu1 %vm2278_vm0, %v2277_v0 }
 0xb1c   :  { %2166 = vmatprep.subr.bf16.mxu1 %v2277_v0  ;;  %v2680_v9 = vadd.f32 %v1589_v51, %v1292_v5 }
 0xb1d   :  { %v2267_v10 = vpop.eup %2266 }
 0xb1e   :  { %v1293_v14 = vmul.f32 %v2267_v10, %v2255_v39 }
 0xb20   :  { %v1591_v15 = vpack.c.bf16 %v1293_v14, %v1292_v5  ;;  %v2682_v16 = vadd.f32 %v1590_v2, %v1293_v14 }
 0xb22   :  { %2157 = vmatmul.mubr.msk.bf16.vlgmr.msra.gmra.mxu1 %vm170_vm3, %v1591_v15 }
 0xb23   :  { %2170 = vmatprep.mubr.msk.bf16.mxu1 %vm2278_vm0, %v2277_v0 }
 0xba1   :  { %v1335_v24 = vpop.f32.mrf.mxu1 }
 0xba3   :  { %v2122_v12 = vpop.f32.mrf.mxu1 }
 0xba5   :  { %v1338_v28 = vpop.f32.mrf.mxu1 }
 0xba6   :  { %v1342_v29 = vpack.c.bf16 %v1338_v28, %v1335_v24 }
 0xba7   :  { %v2123_v31 = vpop.f32.mrf.mxu1 }
 0xba8   :  { %2139 = vmatmul.mubr.msk.bf16.vlgmr.msra.gmra.mxu0 %vm122_vm2, %v1342_v29  ;;  %v55_v31 = vld [vmem:[%s2797_s1 + $0xb8] sm:$0xff] }
 0xba9   :  { %2149 = vmatpush3.bf16.msra.mxu0 %v1544_v30  ;;  %2150 = vmatprep.mubr.msk.bf16.mxu0 %vm2278_vm0, %v2277_v0 }
 0xbaa   :  { %2160 = vmatprep.subr.bf16.mxu0 %v2277_v0 }
 0xbc3   :  { %v1434_v32 = vpop.f32.mrf.mxu1 }
 0xbc5   :  { %v2134_v33 = vpop.f32.mrf.mxu1 }
 0xbc6   :  { %v52_v33 = vld [vmem:[%s2797_s1 + $0xa0] sm:$0xff] }
 0xbc7   :  { %v1437_v35 = vpop.f32.mrf.mxu1 }
 0xbc9   :  { %v2135_v36 = vpop.f32.mrf.mxu1 }
 0xbda   :  { %v1531_v39 = vpop.f32.mrf.mxu1 }
 0xbdc   :  { %v2146_v20 = vpop.f32.mrf.mxu1 }
 0xbde   :  { %v1534_v41 = vpop.f32.mrf.mxu1 }
 0xbdf   :  { %v1538_v42 = vpack.c.bf16 %v1534_v41, %v1531_v39  ;;  %v63_v39 = vld [vmem:[%s2797_s1 + $0xf8] sm:$0xff] }
 0xbe0   :  { %v2147_v44 = vpop.f32.mrf.mxu1  ;;  %v1796_v40 = vpack.c.bf16 %v63_v39, %v62_v37 }
 0xbe1   :  { %2151 = vmatmul.mubr.msk.bf16.vlgmr.msra.gmra.mxu0 %vm122_vm2, %v1538_v42 }
 0xbe2   :  { %2161 = vmatpush3.bf16.msra.mxu0 %v1645_v43  ;;  %v1632_v45 = vpop.f32.mrf.mxu1  ;;  %2162 = vmatprep.mubr.msk.bf16.mxu0 %vm2278_vm0, %v2277_v0 }
 0xbe3   :  { %2174 = vmatprep.subr.bf16.mxu0 %v2277_v0 }
 0xbe4   :  { %v2158_v46 = vpop.f32.mrf.mxu1 }
 0xbe6   :  { %v1635_v47 = vpop.f32.mrf.mxu1 }
 0xbe7   :  { %v1639_v48 = vpack.c.bf16 %v1635_v47, %v1632_v45  ;;  %v1731_v47 = vrot.slane %v2541_v17, %v831_v23  ;;  %v61_v23 = vld [vmem:[%s2797_s1 + $0xe8] sm:$0xff] }
 0xbe8   :  { %v2159_v13 = vpop.f32.mrf.mxu1 }
 0xbe9   :  { %2163 = vmatmul.mubr.msk.bf16.vlgmr.msra.gmra.mxu0 %vm122_vm2, %v1639_v48 }
 0xbea   :  { %2182 = vmatprep.mubr.msk.bf16.mxu0 %vm2278_vm0, %v2277_v0  ;;  %2175 = vmatpush3.bf16.msra.mxu0 %v1796_v40 }
 0xbeb   :  { %2176 = vmatprep.subr.bf16.mxu0 %v2277_v0 }
 0xc68   :  { %v1481_v34 = vpop.f32.mrf.mxu0 }
 0xc69   :  { %v1482_v54 = vadd.f32 %v1481_v34, %v1434_v32  ;;  %v1737_v34 = vrot.slane %v2541_v17, %v881_v38  ;;  %v58_v38 = vld [vmem:[%s2797_s1 + $0xd0] sm:$0xff] }
 0xc6a   :  { %v2140_v49 = vpop.f32.mrf.mxu0 }
 0xc6c   :  { %v1484_v7 = vpop.f32.mrf.mxu0 }
 0xc6d   :  { %v1485_v60 = vadd.f32 %v1484_v7, %v1437_v35  ;;  %v53_v35 = vld [vmem:[%s2797_s1 + $0xa8] sm:$0xff] }
 0xc6e   :  { %v2141_v50 = vpop.f32.mrf.mxu0  ;;  %v1740_v36 = vpack.c.bf16 %v53_v35, %v52_v33 }
 0xca1   :  { %v1580_v8 = vpop.f32.mrf.mxu0 }
 0xca2   :  { %v1587_v56 = vadd.f32 %v1580_v8, %v1482_v54  ;;  %v60_v54 = vld [vmem:[%s2797_s1 + $0xe0] sm:$0xff] }
 0xca3   :  { %v2152_v51 = vpop.f32.mrf.mxu0 }
 0xca5   :  { %v1583_v53 = vpop.f32.mrf.mxu0 }
 0xca6   :  { %v1588_v63 = vadd.f32 %v1583_v53, %v1485_v60  ;;  %v57_v60 = vld [vmem:[%s2797_s1 + $0xc8] sm:$0xff] }
 0xca7   :  { %v2153_v55 = vpop.f32.mrf.mxu0 }
 0xca8   :  { %v1795_v55 = vpack.c.bf16 %v61_v23, %v60_v54 }
 0xca9   :  { %v1681_v59 = vpop.f32.mrf.mxu0 }
 0xcaa   :  { %v1688_v61 = vadd.f32 %v1681_v59, %v1587_v56  ;;  %2177 = vmatpush3.bf16.msra.mxu0 %v1795_v55  ;;  %v59_v56 = vld [vmem:[%s2797_s1 + $0xd8] sm:$0xff]  ;;  %v56_v59 = vld [vmem:[%s2797_s1 + $0xc0] sm:$0xff] }
 0xcab   :  { %v2164_v62 = vpop.f32.mrf.mxu0  ;;  %2178 = vmatprep.subr.bf16.mxu0 %v2277_v0 }
 0xcac   :  { %v1696_v1 = vadd.f32 %v1695_v58, %v1688_v61  ;;  %v1793_v61 = vpack.c.bf16 %v57_v60, %v56_v59  ;;  %v1745_v62 = vsub.s32 5, %v2341_v11 }
 0xcad   :  { %v1684_v2 = vpop.f32.mrf.mxu0 }
 0xcae   :  { %v1689_v3 = vadd.f32 %v1684_v2, %v1588_v63  ;;  %v1700_v4 = vadd.f32 %v1696_v1, %v2546_v25  ;;  %v1746_v63 = vrot.slane %v2715_v57, %v1745_v62 }
 0xcaf   :  { %v2165_v5 = vpop.f32.mrf.mxu0 }
 0xcb0   :  { %v1697_v10 = vadd.f32 %v1695_v58, %v1689_v3  ;;  %v1702_v14 = vsel %vm73_vm1, %v1700_v4, 0.0  ;;  %v1794_v58 = vpack.c.bf16 %v59_v56, %v58_v38 }
 0xcb1   :  { %1703 = vadd.xlane.f32.xlu1 %v1702_v14 }
 0xcb2   :  { %v1701_v15 = vadd.f32 %v1697_v10, %v2548_v21  ;;  %v54_v21 = vld [vmem:[%s2797_s1 + $0xb0] sm:$0xff]  ;;  %2179 = vmatpush3.bf16.msra.mxu0 %v1794_v58  ;;  %s2290_s1 = smov 32  }
 0xcb3   :  { %v1741_v32 = vpack.c.bf16 %v55_v31, %v54_v21  ;;  %2180 = vmatprep.subr.bf16.mxu0 %v2277_v0 }
 0xcb4   :  { %v1705_v6 = vsel %vm73_vm1, %v1701_v15, 0.0 }
 0xcb5   :  { %1706 = vadd.xlane.f32.xlu0 %v1705_v6  ;;  %2167 = vmatpush3.bf16.msra.mxu1 %v1741_v32  ;;  %v1800_v6 = vsub.s32 6, %v2341_v11 }
 0xcb6   :  { %2168 = vmatprep.subr.bf16.mxu1 %v2277_v0  ;;  %2181 = vmatpush3.bf16.msra.mxu0 %v1793_v61 }
 0xcb9   :  { %2169 = vmatpush3.bf16.msra.mxu1 %v1740_v36 }
 0xd3a   :  { %v1704_v18 = vpop.xlane.xlu1 %1703 }
 0xd3b   :  { %v1708_v19 = vmul.f32 0.03125, %v1704_v18  ;;  %v1801_v18 = vrot.slane %v2715_v57, %v1800_v6 }
 0xd3d   :  { %v1710_v22 = vsub.f32 %v1700_v4, %v1708_v19 }
 0xd3e   :  { %v1707_v24 = vpop.xlane.xlu0 %1706 }
 0xd3f   :  { %v1709_v26 = vmul.f32 0.03125, %v1707_v24  ;;  %v1712_v12 = vmul.f32 %v1710_v22, %v1710_v22 }
 0xd41   :  { %v1711_v28 = vsub.f32 %v1701_v15, %v1709_v26  ;;  %v1714_v29 = vsel %vm73_vm1, %v1712_v12, 0.0 }
 0xd42   :  { %1715 = vadd.xlane.f32.xlu0 %v1714_v29 }
 0xd43   :  { %v1713_v25 = vmul.f32 %v1711_v28, %v1711_v28 }
 0xd45   :  { %v1717_v30 = vsel %vm73_vm1, %v1713_v25, 0.0 }
 0xd46   :  { %1718 = vadd.xlane.f32.xlu1 %v1717_v30 }
 0xdcb   :  { %v1716_v20 = vpop.xlane.xlu0 %1715 }
 0xdcc   :  { %v1720_v41 = vmul.f32 0.03125, %v1716_v20 }
 0xdce   :  { %v1722_v42 = vadd.f32 1e-05, %v1720_v41  ;;  %v1699_v41 = vmul.f32 0.25, %v2682_v16 }
 0xdcf   :  { %v1719_v43 = vpop.xlane.xlu1 %1718 }
 0xdd0   :  { %2268 = vrsqrt.f32 %v1722_v42  ;;  %v1721_v44 = vmul.f32 0.03125, %v1719_v43  ;;  %v1698_v42 = vmul.f32 0.25, %v2680_v9  ;;  %v1884_v9 = vrot.slane %v2541_v17, %v1694_v52 }
 0xdd2   :  { %v1723_v45 = vadd.f32 1e-05, %v1721_v44 }
 0xdd4   :  { %2270 = vrsqrt.f32 %v1723_v45 }
 0xddd   :  { %v2269_v46 = vpop.eup %2268 }
 0xdde   :  { %v1726_v48 = vmul.f32 %v2269_v46, %v1710_v22 }
 0xde0   :  { %v1732_v7 = vmul.f32 %v1731_v47, %v1726_v48 }
 0xde1   :  { %v2271_v13 = vpop.eup %2270 }
 0xde2   :  { %v1727_v49 = vmul.f32 %v2271_v13, %v1711_v28  ;;  %v1738_v8 = vadd.f32 %v1737_v34, %v1732_v7  ;;  %v1878_v13 = vrot.slane %v2541_v17, %v932_v27 }
 0xde4   :  { %v1733_v50 = vmul.f32 %v1731_v47, %v1727_v49 }
 0xde6   :  { %v1739_v51 = vadd.f32 %v1737_v34, %v1733_v50 }
 0xde8   :  { %v1742_v53 = vpack.c.bf16 %v1739_v51, %v1738_v8 }
 0xdea   :  { %2171 = vmatmul.mubr.msk.bf16.vlgmr.msra.gmra.mxu1 %vm73_vm1, %v1742_v53 }
 0xeaa   :  { %v1784_v1 = vpop.f32.mrf.mxu1 }
 0xeab   :  { %v1785_v3 = vadd.f32 %v1784_v1, %v1746_v63 }
 0xeac   :  { %v2172_v2 = vpop.f32.mrf.mxu1 }
 0xead   :  { %v1791_v10 = vmax.f32 %v1785_v3, 0.0 }
 0xeae   :  { %v1787_v4 = vpop.f32.mrf.mxu1 }
 0xeaf   :  { %v1788_v5 = vadd.f32 %v1787_v4, %v1746_v63 }
 0xeb0   :  { %v2173_v0 = vpop.f32.mrf.mxu1 }
 0xeb1   :  { %v1792_v14 = vmax.f32 %v1788_v5, 0.0 }
 0xeb3   :  { %v1797_v15 = vpack.c.bf16 %v1792_v14, %v1791_v10 }
 0xeb5   :  { %2183 = vmatmul.mubr.msk.bf16.vlgmr.msra.gmra.mxu0 %vm1802_vm5, %v1797_v15 }
 0xf75   :  { %v1840_v19 = vpop.f32.mrf.mxu0 }
 0xf76   :  { %v1841_v22 = vadd.f32 %v1840_v19, %v1801_v18 }
 0xf77   :  { %v2184_v24 = vpop.f32.mrf.mxu0 }
 0xf78   :  { %v1847_v26 = vadd.f32 %v1841_v22, %v1738_v8 }
 0xf79   :  { %v1843_v12 = vpop.f32.mrf.mxu0 }
 0xf7a   :  { %v1844_v28 = vadd.f32 %v1843_v12, %v1801_v18  ;;  %v1849_v29 = vsel %vm73_vm1, %v1847_v26, 0.0 }
 0xf7b   :  { %1850 = vadd.xlane.f32.xlu0 %v1849_v29  ;;  %v2185_v25 = vpop.f32.mrf.mxu0 }
 0xf7c   :  { %v1848_v30 = vadd.f32 %v1844_v28, %v1739_v51 }
 0xf7e   :  { %v1852_v21 = vsel %vm73_vm1, %v1848_v30, 0.0 }
 0xf7f   :  { %1853 = vadd.xlane.f32.xlu1 %v1852_v21 }
0x1004   :  { %v1851_v31 = vpop.xlane.xlu0 %1850 }
0x1005   :  { %v1855_v32 = vmul.f32 0.03125, %v1851_v31 }
0x1007   :  { %v1857_v33 = vsub.f32 %v1847_v26, %v1855_v32 }
0x1008   :  { %v1854_v35 = vpop.xlane.xlu1 %1853 }
0x1009   :  { %v1856_v36 = vmul.f32 0.03125, %v1854_v35  ;;  %v1859_v57 = vmul.f32 %v1857_v33, %v1857_v33 }
0x100b   :  { %v1858_v37 = vsub.f32 %v1848_v30, %v1856_v36  ;;  %v1861_v39 = vsel %vm73_vm1, %v1859_v57, 0.0 }
0x100c   :  { %1862 = vadd.xlane.f32.xlu0 %v1861_v39 }
0x100d   :  { %v1860_v40 = vmul.f32 %v1858_v37, %v1858_v37 }
0x100f   :  { %v1864_v20 = vsel %vm73_vm1, %v1860_v40, 0.0 }
0x1010   :  { %1865 = vadd.xlane.f32.xlu1 %v1864_v20 }
0x1021   :  { %1891 = vrot.lane.b32.xlu1 %v1699_v41, %s2290_s1 }
0x1022   :  { %1889 = vrot.lane.b32.xlu0 %v1698_v42, %s2290_s1 }
0x1095   :  { %v1863_v43 = vpop.xlane.xlu0 %1862 }
0x1096   :  { %v1867_v44 = vmul.f32 0.03125, %v1863_v43 }
0x1098   :  { %v1869_v45 = vadd.f32 1e-05, %v1867_v44 }
0x1099   :  { %v1866_v46 = vpop.xlane.xlu1 %1865  ;;  %v1890_v51 = vpop.permute.xlu0 %1889 }
0x109a   :  { %2272 = vrsqrt.f32 %v1869_v45  ;;  %v1868_v47 = vmul.f32 0.03125, %v1866_v46 }
0x109c   :  { %v1870_v48 = vadd.f32 1e-05, %v1868_v47 }
0x109d   :  { %v1892_v23 = vpop.permute.xlu1 %1891 }
0x109e   :  { %2274 = vrsqrt.f32 %v1870_v48 }
0x10a7   :  { %v2273_v34 = vpop.eup %2272 }
0x10a8   :  { %v1873_v49 = vmul.f32 %v2273_v34, %v1857_v33 }
0x10aa   :  { %v1879_v16 = vmul.f32 %v1878_v13, %v1873_v49 }
0x10ab   :  { %v2275_v7 = vpop.eup %2274 }
0x10ac   :  { %v1885_v50 = vadd.f32 %v1884_v9, %v1879_v16  ;;  %v1874_v8 = vmul.f32 %v2275_v7, %v1858_v37 }
0x10ae   :  { %v1895_v53 = vsel %vm73_vm1, %v1885_v50, %v1890_v51  ;;  %v1880_v54 = vmul.f32 %v1878_v13, %v1874_v8 }
0x10af   :  { %1898 = vst.msk [vmem:[%s2799_s2] sm:$0xff] %vm1897_vm6, %v1895_v53 }
0x10b0   :  { %v1886_v27 = vadd.f32 %v1884_v9, %v1880_v54 }
0x10b2   :  { %v1896_v55 = vsel %vm73_vm1, %v1886_v27, %v1892_v23 }
0x10b3   :  { %1899 = vst.msk [vmem:[%s2799_s2 + $0x8] sm:$0xff] %vm1897_vm6, %v1896_v55 }

</bundles_post_ra>
